<compile_context>
chip_gen: v7x
topology: tpu7x:2x2x1
jax: 0.10.0
libtpu: 0.0.40
codegen_flags: <defaults>
</compile_context>

<pallas_src>
import jax
import jax.numpy as jnp
import numpy as np
from jax.experimental import pallas as pl
from jax.experimental.pallas import tpu as pltpu


def amrnl_kernel(x_ref, uf_ref, un_ref, uw_ref,
                 wih_ref, whh_ref, b_ref, wbil_ref, bbil_ref,
                 result_ref, regular_ref):
    L, B2, E = x_ref.shape                   # time-major (L, 2*TB, E), bf16
    TB = B2 // 2                             # rows [0,TB)=question, [TB,2TB)=answer
    H = uf_ref.shape[1]

    xf = x_ref[...].reshape(L * B2, E)       # leading-dim merge (free-ish)

    # Hoisted input projection: one (L*2TB, E) @ (E, H) matmul per gate,
    # computed once outside the recurrence.  PyTorch gate order: i, f, g, o.
    def in_proj(g):
        p = jnp.dot(xf, wih_ref[g], preferred_element_type=jnp.float32)
        return (p + b_ref[g]).reshape(L, B2, H)                  # f32
    p_i, p_f, p_g, p_o = in_proj(0), in_proj(1), in_proj(2), in_proj(3)

    whh_i, whh_f, whh_g, whh_o = whh_ref[0], whh_ref[1], whh_ref[2], whh_ref[3]

    h = jnp.zeros((B2, H), jnp.float32)
    c = jnp.zeros((B2, H), jnp.float32)
    for t in range(L):                       # small static L -> fully unrolled
        hb = h.astype(jnp.bfloat16)          # bf16 MXU operand, f32 accumulate
        gi = jax.nn.sigmoid(p_i[t] + jnp.dot(hb, whh_i,
                                             preferred_element_type=jnp.float32))
        gf = jax.nn.sigmoid(p_f[t] + jnp.dot(hb, whh_f,
                                             preferred_element_type=jnp.float32))
        gg = jnp.tanh(p_g[t] + jnp.dot(hb, whh_g,
                                       preferred_element_type=jnp.float32))
        go = jax.nn.sigmoid(p_o[t] + jnp.dot(hb, whh_o,
                                             preferred_element_type=jnp.float32))
        c = gf * c + gi * gg
        h = go * jnp.tanh(c)

    q_h = h[:TB]                             # (TB, H) f32 (sublane-aligned split)
    a_h = h[TB:]
    u_feat = uf_ref[...]                     # (TB, H) f32

    # nn.Bilinear(H, H, 1): out[b] = sum_ij q[b,i] W[i,j] a[b,j] + bias
    qW = jnp.dot(q_h.astype(jnp.bfloat16), wbil_ref[...],
                 preferred_element_type=jnp.float32)
    match = jnp.sum(qW * a_h, axis=-1, keepdims=True) + bbil_ref[0, 0]

    # F.cosine_similarity(q_h, u_feat, dim=-1), eps clamp on the norm product.
    dot_qu = jnp.sum(q_h * u_feat, axis=-1, keepdims=True)
    nq2 = jnp.sum(q_h * q_h, axis=-1, keepdims=True)
    nu2 = jnp.sum(u_feat * u_feat, axis=-1, keepdims=True)
    rel = dot_qu * jax.lax.rsqrt(jnp.maximum(nq2 * nu2, 1e-16))

    result_ref[...] = (match * rel).astype(result_ref.dtype)     # (TB, 1)

    # regular = F.normalize(u_feat - u_neigh @ user_embed.weight, 2, dim=-1)
    diff = u_feat - jnp.dot(un_ref[...], uw_ref[...],
                            preferred_element_type=jnp.float32)
    n2 = jnp.sum(diff * diff, axis=-1, keepdims=True)
    regular_ref[...] = (diff * jax.lax.rsqrt(jnp.maximum(n2, 1e-24))
                        ).astype(regular_ref.dtype)               # (TB, H)


def amrnl_forward(q_emb, a_emb, u_feat, u_neigh, u_weight,
                  w_ih, w_hh, b, w_bil, b_bil, *, batch_block=None):
    B, L, E = q_emb.shape
    H = u_feat.shape[1]
    U = u_weight.shape[0]
    TB = B if batch_block is None else batch_block
    assert B % TB == 0 and (TB % 8 == 0 or TB == B), "batch block must be 8-aligned"
    nb = B // TB

    # One-time parameter layout prep: split fused (., 4H) gate tensors into
    # per-gate (4, ., H) stacks; cast MXU operands to bf16 (f32 accumulation via
    # preferred_element_type).  Sequences go time-major and the q/a batch tiles
    # are interleaved so each grid step reads one contiguous (L, 2TB, E) block.
    wih4 = jnp.transpose(w_ih.reshape(E, 4, H), (1, 0, 2)).astype(jnp.bfloat16)
    whh4 = jnp.transpose(w_hh.reshape(H, 4, H), (1, 0, 2)).astype(jnp.bfloat16)
    b4 = b.reshape(4, 1, H).astype(jnp.float32)
    q_tm = jnp.transpose(q_emb, (1, 0, 2)).astype(jnp.bfloat16)   # (L, B, E)
    a_tm = jnp.transpose(a_emb, (1, 0, 2)).astype(jnp.bfloat16)
    x_tm = jnp.stack([q_tm.reshape(L, nb, TB, E),
                      a_tm.reshape(L, nb, TB, E)],
                     axis=2).reshape(L, 2 * B, E)                 # (L, 2B, E)

    in_specs = [
        pl.BlockSpec((L, 2 * TB, E), lambda i: (0, i, 0)),   # fused q/a (time-major)
        pl.BlockSpec((TB, H), lambda i: (i, 0)),             # user features
        pl.BlockSpec((TB, U), lambda i: (i, 0)),             # adjacency rows
        pl.BlockSpec((U, H), lambda i: (0, 0)),              # user embed table
        pl.BlockSpec((4, E, H), lambda i: (0, 0, 0)),        # W_ih per gate
        pl.BlockSpec((4, H, H), lambda i: (0, 0, 0)),        # W_hh per gate
        pl.BlockSpec((4, 1, H), lambda i: (0, 0, 0)),        # bias per gate
        pl.BlockSpec((H, H), lambda i: (0, 0)),              # bilinear weight
        pl.BlockSpec(memory_space=pltpu.MemorySpace.SMEM),   # bilinear bias
    ]
    out_specs = (pl.BlockSpec((TB, 1), lambda i: (i, 0)),
                 pl.BlockSpec((TB, H), lambda i: (i, 0)))

    return pl.pallas_call(
        amrnl_kernel,
        grid=(nb,),
        in_specs=in_specs,
        out_specs=out_specs,
        out_shape=(jax.ShapeDtypeStruct((B, 1), jnp.float32),
                   jax.ShapeDtypeStruct((B, H), jnp.float32)),
        compiler_params=pltpu.CompilerParams(
            dimension_semantics=("parallel",)),   # shards batch over v7x's 2 TCs
    )(x_tm,
      u_feat.astype(jnp.float32),
      u_neigh.astype(jnp.bfloat16),
      u_weight.astype(jnp.bfloat16),
      wih4, whh4, b4,
      w_bil.astype(jnp.bfloat16),
      b_bil.astype(jnp.float32).reshape(1, 1))


# ----------------------- pure-f32 JAX reference ------------------------------

def _lstm_last_hidden_ref(seq, w_ih, w_hh, b, hidden):
    B, L, _ = seq.shape
    h = jnp.zeros((B, hidden), jnp.float32)
    c = jnp.zeros((B, hidden), jnp.float32)
    for t in range(L):
        x_t = seq[:, t, :]
        gates = x_t @ w_ih + h @ w_hh + b
        i = jax.nn.sigmoid(gates[:, 0 * hidden:1 * hidden])
        f = jax.nn.sigmoid(gates[:, 1 * hidden:2 * hidden])
        g = jnp.tanh(gates[:, 2 * hidden:3 * hidden])
        o = jax.nn.sigmoid(gates[:, 3 * hidden:4 * hidden])
        c = f * c + i * g
        h = o * jnp.tanh(c)
    return h


def amrnl_reference(q_emb, a_emb, u_feat, u_neigh, u_weight,
                    w_ih, w_hh, b, w_bil, b_bil):
    H = u_feat.shape[1]
    q_h = _lstm_last_hidden_ref(q_emb, w_ih, w_hh, b, H)
    a_h = _lstm_last_hidden_ref(a_emb, w_ih, w_hh, b, H)
    match = jnp.sum((q_h @ w_bil) * a_h, axis=-1, keepdims=True) + b_bil
    dot = jnp.sum(q_h * u_feat, axis=-1, keepdims=True)
    nq = jnp.sqrt(jnp.sum(q_h * q_h, axis=-1, keepdims=True))
    nu = jnp.sqrt(jnp.sum(u_feat * u_feat, axis=-1, keepdims=True))
    rel = dot / jnp.maximum(nq * nu, 1e-8)
    result = match * rel
    diff = u_feat - u_neigh @ u_weight
    nrm = jnp.sqrt(jnp.sum(diff * diff, axis=-1, keepdims=True))
    regular = diff / jnp.maximum(nrm, 1e-12)
    return result, regular


if __name__ == "__main__":
    # Small, forward-consistent shapes (B chosen so the batch grid blocks are
    # 8-sublane aligned and grid=(2,) exercises the parallel batch axis).
    B = 16     # batch of (question, answer, user) triples
    L = 8      # content (word) sequence length
    E = 32     # word2vec embedding dim
    H = 32     # args.lstm_hidden_size
    U = 16     # user_count
    V = 64     # word2vec vocabulary size
    NC = 10    # number of content items (questions/answers)

    key = jax.random.PRNGKey(0)
    ks = jax.random.split(key, 12)

    # Pretrained / module parameters (deterministic synthetic init).
    word2vec = jax.random.normal(ks[0], (V, E), jnp.float32)
    content_matrix = jax.random.randint(ks[1], (NC, L), 0, V, jnp.int32)
    user_embed_weight = jax.random.normal(ks[2], (U, H), jnp.float32) * 0.1
    adj = jax.random.uniform(ks[3], (U, U), jnp.float32)
    user_adjance = adj / jnp.sum(adj, axis=-1, keepdims=True)

    # LSTM params (PyTorch layout transposed for right-multiplication).
    w_ih = jax.random.normal(ks[4], (E, 4 * H), jnp.float32) * 0.1
    w_hh = jax.random.normal(ks[5], (H, 4 * H), jnp.float32) * 0.1
    b_ih = jax.random.normal(ks[6], (4 * H,), jnp.float32) * 0.1
    b_hh = jax.random.normal(ks[7], (4 * H,), jnp.float32) * 0.1
    b = (b_ih + b_hh)[None, :]

    # nn.Bilinear(H, H, 1)
    w_bil = jax.random.normal(ks[8], (H, H), jnp.float32) * 0.1
    b_bil = (jax.random.normal(ks[9], (1,), jnp.float32) * 0.1).reshape(1, 1)

    # Forward inputs (score_list is unused by the module's forward).
    question_list = jax.random.randint(ks[10], (B,), 0, NC, jnp.int32)
    answer_list = jax.random.randint(ks[11], (B,), 0, NC, jnp.int32)
    user_list = (jnp.arange(B, dtype=jnp.int32) * 3) % U

    # Embedding-lookup glue (plain JAX gathers).
    q_emb = word2vec[content_matrix[question_list]]   # (B, L, E)
    a_emb = word2vec[content_matrix[answer_list]]     # (B, L, E)
    u_feat = user_embed_weight[user_list]             # (B, H)
    u_neigh = user_adjance[user_list]                 # (B, U)

    result, regular = amrnl_forward(q_emb, a_emb, u_feat, u_neigh,
                                    user_embed_weight, w_ih, w_hh, b,
                                    w_bil, b_bil, batch_block=8)
    jax.block_until_ready((result, regular))

    ref_result, ref_regular = amrnl_reference(q_emb, a_emb, u_feat, u_neigh,
                                              user_embed_weight, w_ih, w_hh, b,
                                              w_bil, b_bil)
    # Kernel uses bf16 MXU operands (f32 accumulation, f32 elementwise), so
    # compare against the pure-f32 reference with bf16-appropriate tolerances.
    np.testing.assert_allclose(np.asarray(result), np.asarray(ref_result),
                               rtol=5e-2, atol=5e-2)
    np.testing.assert_allclose(np.asarray(regular), np.asarray(ref_regular),
                               rtol=2e-2, atol=2e-2)

    print("KERNEL_OK")
</pallas_src>

<mosaic_0001>
module attributes {stable_mosaic.version = 11 : i64} {
  func.func @amrnl_kernel(%arg0: i32, %arg1: memref<8x16x32xbf16, #tpu.memory_space<vmem>>, %arg2: memref<8x32xf32, #tpu.memory_space<vmem>>, %arg3: memref<8x16xbf16, #tpu.memory_space<vmem>>, %arg4: memref<16x32xbf16, #tpu.memory_space<vmem>>, %arg5: memref<4x32x32xbf16, #tpu.memory_space<vmem>>, %arg6: memref<4x32x32xbf16, #tpu.memory_space<vmem>>, %arg7: memref<4x1x32xf32, #tpu.memory_space<vmem>>, %arg8: memref<32x32xbf16, #tpu.memory_space<vmem>>, %arg9: memref<1x1xf32, #tpu.memory_space<smem>>, %arg10: memref<8x1xf32, #tpu.memory_space<vmem>>, %arg11: memref<8x32xf32, #tpu.memory_space<vmem>>) attributes {dimension_semantics = [#tpu.dimension_semantics<parallel>], iteration_bounds = array<i64: 2>, scalar_prefetch = 0 : i64, scratch_operands = 0 : i64, tpu.core_type = #tpu.core_type<tc>, window_params = [{transform_indices = @transform_0, window_bounds = array<i64: 8, 16, 32>}, {transform_indices = @transform_1, window_bounds = array<i64: 8, 32>}, {transform_indices = @transform_2, window_bounds = array<i64: 8, 16>}, {pipeline_mode = #tpu.pipeline_mode<synchronous>, transform_indices = @transform_3, window_bounds = array<i64: 16, 32>}, {pipeline_mode = #tpu.pipeline_mode<synchronous>, transform_indices = @transform_4, window_bounds = array<i64: 4, 32, 32>}, {pipeline_mode = #tpu.pipeline_mode<synchronous>, transform_indices = @transform_5, window_bounds = array<i64: 4, 32, 32>}, {pipeline_mode = #tpu.pipeline_mode<synchronous>, transform_indices = @transform_6, window_bounds = array<i64: 4, 1, 32>}, {pipeline_mode = #tpu.pipeline_mode<synchronous>, transform_indices = @transform_7, window_bounds = array<i64: 32, 32>}, {transform_indices = @transform_8, window_bounds = array<i64: 1, 1>}, {transform_indices = @transform_9, window_bounds = array<i64: 8, 1>}, {transform_indices = @transform_10, window_bounds = array<i64: 8, 32>}]} {
    %c0 = arith.constant 0 : index
    %c0_0 = arith.constant 0 : index
    %c0_1 = arith.constant 0 : index
    %0 = vector.load %arg1[%c0, %c0_0, %c0_1] : memref<8x16x32xbf16, #tpu.memory_space<vmem>>, vector<8x16x32xbf16>
    %1 = vector.shape_cast %0 : vector<8x16x32xbf16> to vector<128x32xbf16>
    %c0_2 = arith.constant 0 : index
    %c0_3 = arith.constant 0 : index
    %c0_4 = arith.constant 0 : index
    %2 = vector.load %arg5[%c0_2, %c0_3, %c0_4] : memref<4x32x32xbf16, #tpu.memory_space<vmem>>, vector<1x32x32xbf16>
    %3 = vector.shape_cast %2 : vector<1x32x32xbf16> to vector<32x32xbf16>
    %cst = arith.constant dense<0.000000e+00> : vector<128x32xf32>
    %4 = tpu.matmul %1, %3, %cst {dimension_numbers = #tpu.dot_dimension_numbers<[1], [0], [0], [1], [0, 0, 1, 1], [], []>} : vector<128x32xbf16>, vector<32x32xbf16>, vector<128x32xf32> -> vector<128x32xf32>
    %c0_5 = arith.constant 0 : index
    %c0_6 = arith.constant 0 : index
    %c0_7 = arith.constant 0 : index
    %5 = vector.load %arg7[%c0_5, %c0_6, %c0_7] : memref<4x1x32xf32, #tpu.memory_space<vmem>>, vector<1x1x32xf32>
    %6 = vector.shape_cast %5 : vector<1x1x32xf32> to vector<1x32xf32>
    %7 = vector.broadcast %6 : vector<1x32xf32> to vector<128x32xf32>
    %8 = arith.addf %4, %7 : vector<128x32xf32>
    %9 = vector.shape_cast %8 : vector<128x32xf32> to vector<8x16x32xf32>
    %c1 = arith.constant 1 : index
    %c0_8 = arith.constant 0 : index
    %c0_9 = arith.constant 0 : index
    %10 = vector.load %arg5[%c1, %c0_8, %c0_9] : memref<4x32x32xbf16, #tpu.memory_space<vmem>>, vector<1x32x32xbf16>
    %11 = vector.shape_cast %10 : vector<1x32x32xbf16> to vector<32x32xbf16>
    %cst_10 = arith.constant dense<0.000000e+00> : vector<128x32xf32>
    %12 = tpu.matmul %1, %11, %cst_10 {dimension_numbers = #tpu.dot_dimension_numbers<[1], [0], [0], [1], [0, 0, 1, 1], [], []>} : vector<128x32xbf16>, vector<32x32xbf16>, vector<128x32xf32> -> vector<128x32xf32>
    %c1_11 = arith.constant 1 : index
    %c0_12 = arith.constant 0 : index
    %c0_13 = arith.constant 0 : index
    %13 = vector.load %arg7[%c1_11, %c0_12, %c0_13] : memref<4x1x32xf32, #tpu.memory_space<vmem>>, vector<1x1x32xf32>
    %14 = vector.shape_cast %13 : vector<1x1x32xf32> to vector<1x32xf32>
    %15 = vector.broadcast %14 : vector<1x32xf32> to vector<128x32xf32>
    %16 = arith.addf %12, %15 : vector<128x32xf32>
    %17 = vector.shape_cast %16 : vector<128x32xf32> to vector<8x16x32xf32>
    %c2 = arith.constant 2 : index
    %c0_14 = arith.constant 0 : index
    %c0_15 = arith.constant 0 : index
    %18 = vector.load %arg5[%c2, %c0_14, %c0_15] : memref<4x32x32xbf16, #tpu.memory_space<vmem>>, vector<1x32x32xbf16>
    %19 = vector.shape_cast %18 : vector<1x32x32xbf16> to vector<32x32xbf16>
    %cst_16 = arith.constant dense<0.000000e+00> : vector<128x32xf32>
    %20 = tpu.matmul %1, %19, %cst_16 {dimension_numbers = #tpu.dot_dimension_numbers<[1], [0], [0], [1], [0, 0, 1, 1], [], []>} : vector<128x32xbf16>, vector<32x32xbf16>, vector<128x32xf32> -> vector<128x32xf32>
    %c2_17 = arith.constant 2 : index
    %c0_18 = arith.constant 0 : index
    %c0_19 = arith.constant 0 : index
    %21 = vector.load %arg7[%c2_17, %c0_18, %c0_19] : memref<4x1x32xf32, #tpu.memory_space<vmem>>, vector<1x1x32xf32>
    %22 = vector.shape_cast %21 : vector<1x1x32xf32> to vector<1x32xf32>
    %23 = vector.broadcast %22 : vector<1x32xf32> to vector<128x32xf32>
    %24 = arith.addf %20, %23 : vector<128x32xf32>
    %25 = vector.shape_cast %24 : vector<128x32xf32> to vector<8x16x32xf32>
    %c3 = arith.constant 3 : index
    %c0_20 = arith.constant 0 : index
    %c0_21 = arith.constant 0 : index
    %26 = vector.load %arg5[%c3, %c0_20, %c0_21] : memref<4x32x32xbf16, #tpu.memory_space<vmem>>, vector<1x32x32xbf16>
    %27 = vector.shape_cast %26 : vector<1x32x32xbf16> to vector<32x32xbf16>
    %cst_22 = arith.constant dense<0.000000e+00> : vector<128x32xf32>
    %28 = tpu.matmul %1, %27, %cst_22 {dimension_numbers = #tpu.dot_dimension_numbers<[1], [0], [0], [1], [0, 0, 1, 1], [], []>} : vector<128x32xbf16>, vector<32x32xbf16>, vector<128x32xf32> -> vector<128x32xf32>
    %c3_23 = arith.constant 3 : index
    %c0_24 = arith.constant 0 : index
    %c0_25 = arith.constant 0 : index
    %29 = vector.load %arg7[%c3_23, %c0_24, %c0_25] : memref<4x1x32xf32, #tpu.memory_space<vmem>>, vector<1x1x32xf32>
    %30 = vector.shape_cast %29 : vector<1x1x32xf32> to vector<1x32xf32>
    %31 = vector.broadcast %30 : vector<1x32xf32> to vector<128x32xf32>
    %32 = arith.addf %28, %31 : vector<128x32xf32>
    %33 = vector.shape_cast %32 : vector<128x32xf32> to vector<8x16x32xf32>
    %c0_26 = arith.constant 0 : index
    %c0_27 = arith.constant 0 : index
    %c0_28 = arith.constant 0 : index
    %34 = vector.load %arg6[%c0_26, %c0_27, %c0_28] : memref<4x32x32xbf16, #tpu.memory_space<vmem>>, vector<1x32x32xbf16>
    %35 = vector.shape_cast %34 : vector<1x32x32xbf16> to vector<32x32xbf16>
    %c1_29 = arith.constant 1 : index
    %c0_30 = arith.constant 0 : index
    %c0_31 = arith.constant 0 : index
    %36 = vector.load %arg6[%c1_29, %c0_30, %c0_31] : memref<4x32x32xbf16, #tpu.memory_space<vmem>>, vector<1x32x32xbf16>
    %37 = vector.shape_cast %36 : vector<1x32x32xbf16> to vector<32x32xbf16>
    %c2_32 = arith.constant 2 : index
    %c0_33 = arith.constant 0 : index
    %c0_34 = arith.constant 0 : index
    %38 = vector.load %arg6[%c2_32, %c0_33, %c0_34] : memref<4x32x32xbf16, #tpu.memory_space<vmem>>, vector<1x32x32xbf16>
    %39 = vector.shape_cast %38 : vector<1x32x32xbf16> to vector<32x32xbf16>
    %c3_35 = arith.constant 3 : index
    %c0_36 = arith.constant 0 : index
    %c0_37 = arith.constant 0 : index
    %40 = vector.load %arg6[%c3_35, %c0_36, %c0_37] : memref<4x32x32xbf16, #tpu.memory_space<vmem>>, vector<1x32x32xbf16>
    %41 = vector.shape_cast %40 : vector<1x32x32xbf16> to vector<32x32xbf16>
    %cst_38 = arith.constant 0.000000e+00 : f32
    %42 = vector.broadcast %cst_38 : f32 to vector<16x32xf32>
    %cst_39 = arith.constant 0.000000e+00 : f32
    %43 = vector.broadcast %cst_39 : f32 to vector<16x32xf32>
    %44 = arith.truncf %42 : vector<16x32xf32> to vector<16x32xbf16>
    %45 = vector.extract_strided_slice %9 {offsets = [0, 0, 0], sizes = [1, 16, 32], strides = [1, 1, 1]} : vector<8x16x32xf32> to vector<1x16x32xf32>
    %46 = vector.shape_cast %45 : vector<1x16x32xf32> to vector<16x32xf32>
    %cst_40 = arith.constant dense<0.000000e+00> : vector<16x32xf32>
    %47 = tpu.matmul %44, %35, %cst_40 {dimension_numbers = #tpu.dot_dimension_numbers<[1], [0], [0], [1], [0, 0, 1, 1], [], []>} : vector<16x32xbf16>, vector<32x32xbf16>, vector<16x32xf32> -> vector<16x32xf32>
    %48 = arith.addf %46, %47 : vector<16x32xf32>
    %49 = arith.negf %48 : vector<16x32xf32>
    %50 = math.exp %49 : vector<16x32xf32>
    %cst_41 = arith.constant 1.000000e+00 : f32
    %51 = vector.broadcast %cst_41 : f32 to vector<16x32xf32>
    %52 = arith.addf %51, %50 : vector<16x32xf32>
    %53 = arith.divf %51, %52 : vector<16x32xf32>
    %54 = vector.extract_strided_slice %17 {offsets = [0, 0, 0], sizes = [1, 16, 32], strides = [1, 1, 1]} : vector<8x16x32xf32> to vector<1x16x32xf32>
    %55 = vector.shape_cast %54 : vector<1x16x32xf32> to vector<16x32xf32>
    %cst_42 = arith.constant dense<0.000000e+00> : vector<16x32xf32>
    %56 = tpu.matmul %44, %37, %cst_42 {dimension_numbers = #tpu.dot_dimension_numbers<[1], [0], [0], [1], [0, 0, 1, 1], [], []>} : vector<16x32xbf16>, vector<32x32xbf16>, vector<16x32xf32> -> vector<16x32xf32>
    %57 = arith.addf %55, %56 : vector<16x32xf32>
    %58 = arith.negf %57 : vector<16x32xf32>
    %59 = math.exp %58 : vector<16x32xf32>
    %cst_43 = arith.constant 1.000000e+00 : f32
    %60 = vector.broadcast %cst_43 : f32 to vector<16x32xf32>
    %61 = arith.addf %60, %59 : vector<16x32xf32>
    %62 = arith.divf %60, %61 : vector<16x32xf32>
    %63 = vector.extract_strided_slice %25 {offsets = [0, 0, 0], sizes = [1, 16, 32], strides = [1, 1, 1]} : vector<8x16x32xf32> to vector<1x16x32xf32>
    %64 = vector.shape_cast %63 : vector<1x16x32xf32> to vector<16x32xf32>
    %cst_44 = arith.constant dense<0.000000e+00> : vector<16x32xf32>
    %65 = tpu.matmul %44, %39, %cst_44 {dimension_numbers = #tpu.dot_dimension_numbers<[1], [0], [0], [1], [0, 0, 1, 1], [], []>} : vector<16x32xbf16>, vector<32x32xbf16>, vector<16x32xf32> -> vector<16x32xf32>
    %66 = arith.addf %64, %65 : vector<16x32xf32>
    %67 = math.tanh %66 : vector<16x32xf32>
    %68 = vector.extract_strided_slice %33 {offsets = [0, 0, 0], sizes = [1, 16, 32], strides = [1, 1, 1]} : vector<8x16x32xf32> to vector<1x16x32xf32>
    %69 = vector.shape_cast %68 : vector<1x16x32xf32> to vector<16x32xf32>
    %cst_45 = arith.constant dense<0.000000e+00> : vector<16x32xf32>
    %70 = tpu.matmul %44, %41, %cst_45 {dimension_numbers = #tpu.dot_dimension_numbers<[1], [0], [0], [1], [0, 0, 1, 1], [], []>} : vector<16x32xbf16>, vector<32x32xbf16>, vector<16x32xf32> -> vector<16x32xf32>
    %71 = arith.addf %69, %70 : vector<16x32xf32>
    %72 = arith.negf %71 : vector<16x32xf32>
    %73 = math.exp %72 : vector<16x32xf32>
    %cst_46 = arith.constant 1.000000e+00 : f32
    %74 = vector.broadcast %cst_46 : f32 to vector<16x32xf32>
    %75 = arith.addf %74, %73 : vector<16x32xf32>
    %76 = arith.divf %74, %75 : vector<16x32xf32>
    %77 = arith.mulf %62, %43 : vector<16x32xf32>
    %78 = arith.mulf %53, %67 : vector<16x32xf32>
    %79 = arith.addf %77, %78 : vector<16x32xf32>
    %80 = math.tanh %79 : vector<16x32xf32>
    %81 = arith.mulf %76, %80 : vector<16x32xf32>
    %82 = arith.truncf %81 : vector<16x32xf32> to vector<16x32xbf16>
    %83 = vector.extract_strided_slice %9 {offsets = [1, 0, 0], sizes = [1, 16, 32], strides = [1, 1, 1]} : vector<8x16x32xf32> to vector<1x16x32xf32>
    %84 = vector.shape_cast %83 : vector<1x16x32xf32> to vector<16x32xf32>
    %cst_47 = arith.constant dense<0.000000e+00> : vector<16x32xf32>
    %85 = tpu.matmul %82, %35, %cst_47 {dimension_numbers = #tpu.dot_dimension_numbers<[1], [0], [0], [1], [0, 0, 1, 1], [], []>} : vector<16x32xbf16>, vector<32x32xbf16>, vector<16x32xf32> -> vector<16x32xf32>
    %86 = arith.addf %84, %85 : vector<16x32xf32>
    %87 = arith.negf %86 : vector<16x32xf32>
    %88 = math.exp %87 : vector<16x32xf32>
    %cst_48 = arith.constant 1.000000e+00 : f32
    %89 = vector.broadcast %cst_48 : f32 to vector<16x32xf32>
    %90 = arith.addf %89, %88 : vector<16x32xf32>
    %91 = arith.divf %89, %90 : vector<16x32xf32>
    %92 = vector.extract_strided_slice %17 {offsets = [1, 0, 0], sizes = [1, 16, 32], strides = [1, 1, 1]} : vector<8x16x32xf32> to vector<1x16x32xf32>
    %93 = vector.shape_cast %92 : vector<1x16x32xf32> to vector<16x32xf32>
    %cst_49 = arith.constant dense<0.000000e+00> : vector<16x32xf32>
    %94 = tpu.matmul %82, %37, %cst_49 {dimension_numbers = #tpu.dot_dimension_numbers<[1], [0], [0], [1], [0, 0, 1, 1], [], []>} : vector<16x32xbf16>, vector<32x32xbf16>, vector<16x32xf32> -> vector<16x32xf32>
    %95 = arith.addf %93, %94 : vector<16x32xf32>
    %96 = arith.negf %95 : vector<16x32xf32>
    %97 = math.exp %96 : vector<16x32xf32>
    %cst_50 = arith.constant 1.000000e+00 : f32
    %98 = vector.broadcast %cst_50 : f32 to vector<16x32xf32>
    %99 = arith.addf %98, %97 : vector<16x32xf32>
    %100 = arith.divf %98, %99 : vector<16x32xf32>
    %101 = vector.extract_strided_slice %25 {offsets = [1, 0, 0], sizes = [1, 16, 32], strides = [1, 1, 1]} : vector<8x16x32xf32> to vector<1x16x32xf32>
    %102 = vector.shape_cast %101 : vector<1x16x32xf32> to vector<16x32xf32>
    %cst_51 = arith.constant dense<0.000000e+00> : vector<16x32xf32>
    %103 = tpu.matmul %82, %39, %cst_51 {dimension_numbers = #tpu.dot_dimension_numbers<[1], [0], [0], [1], [0, 0, 1, 1], [], []>} : vector<16x32xbf16>, vector<32x32xbf16>, vector<16x32xf32> -> vector<16x32xf32>
    %104 = arith.addf %102, %103 : vector<16x32xf32>
    %105 = math.tanh %104 : vector<16x32xf32>
    %106 = vector.extract_strided_slice %33 {offsets = [1, 0, 0], sizes = [1, 16, 32], strides = [1, 1, 1]} : vector<8x16x32xf32> to vector<1x16x32xf32>
    %107 = vector.shape_cast %106 : vector<1x16x32xf32> to vector<16x32xf32>
    %cst_52 = arith.constant dense<0.000000e+00> : vector<16x32xf32>
    %108 = tpu.matmul %82, %41, %cst_52 {dimension_numbers = #tpu.dot_dimension_numbers<[1], [0], [0], [1], [0, 0, 1, 1], [], []>} : vector<16x32xbf16>, vector<32x32xbf16>, vector<16x32xf32> -> vector<16x32xf32>
    %109 = arith.addf %107, %108 : vector<16x32xf32>
    %110 = arith.negf %109 : vector<16x32xf32>
    %111 = math.exp %110 : vector<16x32xf32>
    %cst_53 = arith.constant 1.000000e+00 : f32
    %112 = vector.broadcast %cst_53 : f32 to vector<16x32xf32>
    %113 = arith.addf %112, %111 : vector<16x32xf32>
    %114 = arith.divf %112, %113 : vector<16x32xf32>
    %115 = arith.mulf %100, %79 : vector<16x32xf32>
    %116 = arith.mulf %91, %105 : vector<16x32xf32>
    %117 = arith.addf %115, %116 : vector<16x32xf32>
    %118 = math.tanh %117 : vector<16x32xf32>
    %119 = arith.mulf %114, %118 : vector<16x32xf32>
    %120 = arith.truncf %119 : vector<16x32xf32> to vector<16x32xbf16>
    %121 = vector.extract_strided_slice %9 {offsets = [2, 0, 0], sizes = [1, 16, 32], strides = [1, 1, 1]} : vector<8x16x32xf32> to vector<1x16x32xf32>
    %122 = vector.shape_cast %121 : vector<1x16x32xf32> to vector<16x32xf32>
    %cst_54 = arith.constant dense<0.000000e+00> : vector<16x32xf32>
    %123 = tpu.matmul %120, %35, %cst_54 {dimension_numbers = #tpu.dot_dimension_numbers<[1], [0], [0], [1], [0, 0, 1, 1], [], []>} : vector<16x32xbf16>, vector<32x32xbf16>, vector<16x32xf32> -> vector<16x32xf32>
    %124 = arith.addf %122, %123 : vector<16x32xf32>
    %125 = arith.negf %124 : vector<16x32xf32>
    %126 = math.exp %125 : vector<16x32xf32>
    %cst_55 = arith.constant 1.000000e+00 : f32
    %127 = vector.broadcast %cst_55 : f32 to vector<16x32xf32>
    %128 = arith.addf %127, %126 : vector<16x32xf32>
    %129 = arith.divf %127, %128 : vector<16x32xf32>
    %130 = vector.extract_strided_slice %17 {offsets = [2, 0, 0], sizes = [1, 16, 32], strides = [1, 1, 1]} : vector<8x16x32xf32> to vector<1x16x32xf32>
    %131 = vector.shape_cast %130 : vector<1x16x32xf32> to vector<16x32xf32>
    %cst_56 = arith.constant dense<0.000000e+00> : vector<16x32xf32>
    %132 = tpu.matmul %120, %37, %cst_56 {dimension_numbers = #tpu.dot_dimension_numbers<[1], [0], [0], [1], [0, 0, 1, 1], [], []>} : vector<16x32xbf16>, vector<32x32xbf16>, vector<16x32xf32> -> vector<16x32xf32>
    %133 = arith.addf %131, %132 : vector<16x32xf32>
    %134 = arith.negf %133 : vector<16x32xf32>
    %135 = math.exp %134 : vector<16x32xf32>
    %cst_57 = arith.constant 1.000000e+00 : f32
    %136 = vector.broadcast %cst_57 : f32 to vector<16x32xf32>
    %137 = arith.addf %136, %135 : vector<16x32xf32>
    %138 = arith.divf %136, %137 : vector<16x32xf32>
    %139 = vector.extract_strided_slice %25 {offsets = [2, 0, 0], sizes = [1, 16, 32], strides = [1, 1, 1]} : vector<8x16x32xf32> to vector<1x16x32xf32>
    %140 = vector.shape_cast %139 : vector<1x16x32xf32> to vector<16x32xf32>
    %cst_58 = arith.constant dense<0.000000e+00> : vector<16x32xf32>
    %141 = tpu.matmul %120, %39, %cst_58 {dimension_numbers = #tpu.dot_dimension_numbers<[1], [0], [0], [1], [0, 0, 1, 1], [], []>} : vector<16x32xbf16>, vector<32x32xbf16>, vector<16x32xf32> -> vector<16x32xf32>
    %142 = arith.addf %140, %141 : vector<16x32xf32>
    %143 = math.tanh %142 : vector<16x32xf32>
    %144 = vector.extract_strided_slice %33 {offsets = [2, 0, 0], sizes = [1, 16, 32], strides = [1, 1, 1]} : vector<8x16x32xf32> to vector<1x16x32xf32>
    %145 = vector.shape_cast %144 : vector<1x16x32xf32> to vector<16x32xf32>
    %cst_59 = arith.constant dense<0.000000e+00> : vector<16x32xf32>
    %146 = tpu.matmul %120, %41, %cst_59 {dimension_numbers = #tpu.dot_dimension_numbers<[1], [0], [0], [1], [0, 0, 1, 1], [], []>} : vector<16x32xbf16>, vector<32x32xbf16>, vector<16x32xf32> -> vector<16x32xf32>
    %147 = arith.addf %145, %146 : vector<16x32xf32>
    %148 = arith.negf %147 : vector<16x32xf32>
    %149 = math.exp %148 : vector<16x32xf32>
    %cst_60 = arith.constant 1.000000e+00 : f32
    %150 = vector.broadcast %cst_60 : f32 to vector<16x32xf32>
    %151 = arith.addf %150, %149 : vector<16x32xf32>
    %152 = arith.divf %150, %151 : vector<16x32xf32>
    %153 = arith.mulf %138, %117 : vector<16x32xf32>
    %154 = arith.mulf %129, %143 : vector<16x32xf32>
    %155 = arith.addf %153, %154 : vector<16x32xf32>
    %156 = math.tanh %155 : vector<16x32xf32>
    %157 = arith.mulf %152, %156 : vector<16x32xf32>
    %158 = arith.truncf %157 : vector<16x32xf32> to vector<16x32xbf16>
    %159 = vector.extract_strided_slice %9 {offsets = [3, 0, 0], sizes = [1, 16, 32], strides = [1, 1, 1]} : vector<8x16x32xf32> to vector<1x16x32xf32>
    %160 = vector.shape_cast %159 : vector<1x16x32xf32> to vector<16x32xf32>
    %cst_61 = arith.constant dense<0.000000e+00> : vector<16x32xf32>
    %161 = tpu.matmul %158, %35, %cst_61 {dimension_numbers = #tpu.dot_dimension_numbers<[1], [0], [0], [1], [0, 0, 1, 1], [], []>} : vector<16x32xbf16>, vector<32x32xbf16>, vector<16x32xf32> -> vector<16x32xf32>
    %162 = arith.addf %160, %161 : vector<16x32xf32>
    %163 = arith.negf %162 : vector<16x32xf32>
    %164 = math.exp %163 : vector<16x32xf32>
    %cst_62 = arith.constant 1.000000e+00 : f32
    %165 = vector.broadcast %cst_62 : f32 to vector<16x32xf32>
    %166 = arith.addf %165, %164 : vector<16x32xf32>
    %167 = arith.divf %165, %166 : vector<16x32xf32>
    %168 = vector.extract_strided_slice %17 {offsets = [3, 0, 0], sizes = [1, 16, 32], strides = [1, 1, 1]} : vector<8x16x32xf32> to vector<1x16x32xf32>
    %169 = vector.shape_cast %168 : vector<1x16x32xf32> to vector<16x32xf32>
    %cst_63 = arith.constant dense<0.000000e+00> : vector<16x32xf32>
    %170 = tpu.matmul %158, %37, %cst_63 {dimension_numbers = #tpu.dot_dimension_numbers<[1], [0], [0], [1], [0, 0, 1, 1], [], []>} : vector<16x32xbf16>, vector<32x32xbf16>, vector<16x32xf32> -> vector<16x32xf32>
    %171 = arith.addf %169, %170 : vector<16x32xf32>
    %172 = arith.negf %171 : vector<16x32xf32>
    %173 = math.exp %172 : vector<16x32xf32>
    %cst_64 = arith.constant 1.000000e+00 : f32
    %174 = vector.broadcast %cst_64 : f32 to vector<16x32xf32>
    %175 = arith.addf %174, %173 : vector<16x32xf32>
    %176 = arith.divf %174, %175 : vector<16x32xf32>
    %177 = vector.extract_strided_slice %25 {offsets = [3, 0, 0], sizes = [1, 16, 32], strides = [1, 1, 1]} : vector<8x16x32xf32> to vector<1x16x32xf32>
    %178 = vector.shape_cast %177 : vector<1x16x32xf32> to vector<16x32xf32>
    %cst_65 = arith.constant dense<0.000000e+00> : vector<16x32xf32>
    %179 = tpu.matmul %158, %39, %cst_65 {dimension_numbers = #tpu.dot_dimension_numbers<[1], [0], [0], [1], [0, 0, 1, 1], [], []>} : vector<16x32xbf16>, vector<32x32xbf16>, vector<16x32xf32> -> vector<16x32xf32>
    %180 = arith.addf %178, %179 : vector<16x32xf32>
    %181 = math.tanh %180 : vector<16x32xf32>
    %182 = vector.extract_strided_slice %33 {offsets = [3, 0, 0], sizes = [1, 16, 32], strides = [1, 1, 1]} : vector<8x16x32xf32> to vector<1x16x32xf32>
    %183 = vector.shape_cast %182 : vector<1x16x32xf32> to vector<16x32xf32>
    %cst_66 = arith.constant dense<0.000000e+00> : vector<16x32xf32>
    %184 = tpu.matmul %158, %41, %cst_66 {dimension_numbers = #tpu.dot_dimension_numbers<[1], [0], [0], [1], [0, 0, 1, 1], [], []>} : vector<16x32xbf16>, vector<32x32xbf16>, vector<16x32xf32> -> vector<16x32xf32>
    %185 = arith.addf %183, %184 : vector<16x32xf32>
    %186 = arith.negf %185 : vector<16x32xf32>
    %187 = math.exp %186 : vector<16x32xf32>
    %cst_67 = arith.constant 1.000000e+00 : f32
    %188 = vector.broadcast %cst_67 : f32 to vector<16x32xf32>
    %189 = arith.addf %188, %187 : vector<16x32xf32>
    %190 = arith.divf %188, %189 : vector<16x32xf32>
    %191 = arith.mulf %176, %155 : vector<16x32xf32>
    %192 = arith.mulf %167, %181 : vector<16x32xf32>
    %193 = arith.addf %191, %192 : vector<16x32xf32>
    %194 = math.tanh %193 : vector<16x32xf32>
    %195 = arith.mulf %190, %194 : vector<16x32xf32>
    %196 = arith.truncf %195 : vector<16x32xf32> to vector<16x32xbf16>
    %197 = vector.extract_strided_slice %9 {offsets = [4, 0, 0], sizes = [1, 16, 32], strides = [1, 1, 1]} : vector<8x16x32xf32> to vector<1x16x32xf32>
    %198 = vector.shape_cast %197 : vector<1x16x32xf32> to vector<16x32xf32>
    %cst_68 = arith.constant dense<0.000000e+00> : vector<16x32xf32>
    %199 = tpu.matmul %196, %35, %cst_68 {dimension_numbers = #tpu.dot_dimension_numbers<[1], [0], [0], [1], [0, 0, 1, 1], [], []>} : vector<16x32xbf16>, vector<32x32xbf16>, vector<16x32xf32> -> vector<16x32xf32>
    %200 = arith.addf %198, %199 : vector<16x32xf32>
    %201 = arith.negf %200 : vector<16x32xf32>
    %202 = math.exp %201 : vector<16x32xf32>
    %cst_69 = arith.constant 1.000000e+00 : f32
    %203 = vector.broadcast %cst_69 : f32 to vector<16x32xf32>
    %204 = arith.addf %203, %202 : vector<16x32xf32>
    %205 = arith.divf %203, %204 : vector<16x32xf32>
    %206 = vector.extract_strided_slice %17 {offsets = [4, 0, 0], sizes = [1, 16, 32], strides = [1, 1, 1]} : vector<8x16x32xf32> to vector<1x16x32xf32>
    %207 = vector.shape_cast %206 : vector<1x16x32xf32> to vector<16x32xf32>
    %cst_70 = arith.constant dense<0.000000e+00> : vector<16x32xf32>
    %208 = tpu.matmul %196, %37, %cst_70 {dimension_numbers = #tpu.dot_dimension_numbers<[1], [0], [0], [1], [0, 0, 1, 1], [], []>} : vector<16x32xbf16>, vector<32x32xbf16>, vector<16x32xf32> -> vector<16x32xf32>
    %209 = arith.addf %207, %208 : vector<16x32xf32>
    %210 = arith.negf %209 : vector<16x32xf32>
    %211 = math.exp %210 : vector<16x32xf32>
    %cst_71 = arith.constant 1.000000e+00 : f32
    %212 = vector.broadcast %cst_71 : f32 to vector<16x32xf32>
    %213 = arith.addf %212, %211 : vector<16x32xf32>
    %214 = arith.divf %212, %213 : vector<16x32xf32>
    %215 = vector.extract_strided_slice %25 {offsets = [4, 0, 0], sizes = [1, 16, 32], strides = [1, 1, 1]} : vector<8x16x32xf32> to vector<1x16x32xf32>
    %216 = vector.shape_cast %215 : vector<1x16x32xf32> to vector<16x32xf32>
    %cst_72 = arith.constant dense<0.000000e+00> : vector<16x32xf32>
    %217 = tpu.matmul %196, %39, %cst_72 {dimension_numbers = #tpu.dot_dimension_numbers<[1], [0], [0], [1], [0, 0, 1, 1], [], []>} : vector<16x32xbf16>, vector<32x32xbf16>, vector<16x32xf32> -> vector<16x32xf32>
    %218 = arith.addf %216, %217 : vector<16x32xf32>
    %219 = math.tanh %218 : vector<16x32xf32>
    %220 = vector.extract_strided_slice %33 {offsets = [4, 0, 0], sizes = [1, 16, 32], strides = [1, 1, 1]} : vector<8x16x32xf32> to vector<1x16x32xf32>
    %221 = vector.shape_cast %220 : vector<1x16x32xf32> to vector<16x32xf32>
    %cst_73 = arith.constant dense<0.000000e+00> : vector<16x32xf32>
    %222 = tpu.matmul %196, %41, %cst_73 {dimension_numbers = #tpu.dot_dimension_numbers<[1], [0], [0], [1], [0, 0, 1, 1], [], []>} : vector<16x32xbf16>, vector<32x32xbf16>, vector<16x32xf32> -> vector<16x32xf32>
    %223 = arith.addf %221, %222 : vector<16x32xf32>
    %224 = arith.negf %223 : vector<16x32xf32>
    %225 = math.exp %224 : vector<16x32xf32>
    %cst_74 = arith.constant 1.000000e+00 : f32
    %226 = vector.broadcast %cst_74 : f32 to vector<16x32xf32>
    %227 = arith.addf %226, %225 : vector<16x32xf32>
    %228 = arith.divf %226, %227 : vector<16x32xf32>
    %229 = arith.mulf %214, %193 : vector<16x32xf32>
    %230 = arith.mulf %205, %219 : vector<16x32xf32>
    %231 = arith.addf %229, %230 : vector<16x32xf32>
    %232 = math.tanh %231 : vector<16x32xf32>
    %233 = arith.mulf %228, %232 : vector<16x32xf32>
    %234 = arith.truncf %233 : vector<16x32xf32> to vector<16x32xbf16>
    %235 = vector.extract_strided_slice %9 {offsets = [5, 0, 0], sizes = [1, 16, 32], strides = [1, 1, 1]} : vector<8x16x32xf32> to vector<1x16x32xf32>
    %236 = vector.shape_cast %235 : vector<1x16x32xf32> to vector<16x32xf32>
    %cst_75 = arith.constant dense<0.000000e+00> : vector<16x32xf32>
    %237 = tpu.matmul %234, %35, %cst_75 {dimension_numbers = #tpu.dot_dimension_numbers<[1], [0], [0], [1], [0, 0, 1, 1], [], []>} : vector<16x32xbf16>, vector<32x32xbf16>, vector<16x32xf32> -> vector<16x32xf32>
    %238 = arith.addf %236, %237 : vector<16x32xf32>
    %239 = arith.negf %238 : vector<16x32xf32>
    %240 = math.exp %239 : vector<16x32xf32>
    %cst_76 = arith.constant 1.000000e+00 : f32
    %241 = vector.broadcast %cst_76 : f32 to vector<16x32xf32>
    %242 = arith.addf %241, %240 : vector<16x32xf32>
    %243 = arith.divf %241, %242 : vector<16x32xf32>
    %244 = vector.extract_strided_slice %17 {offsets = [5, 0, 0], sizes = [1, 16, 32], strides = [1, 1, 1]} : vector<8x16x32xf32> to vector<1x16x32xf32>
    %245 = vector.shape_cast %244 : vector<1x16x32xf32> to vector<16x32xf32>
    %cst_77 = arith.constant dense<0.000000e+00> : vector<16x32xf32>
    %246 = tpu.matmul %234, %37, %cst_77 {dimension_numbers = #tpu.dot_dimension_numbers<[1], [0], [0], [1], [0, 0, 1, 1], [], []>} : vector<16x32xbf16>, vector<32x32xbf16>, vector<16x32xf32> -> vector<16x32xf32>
    %247 = arith.addf %245, %246 : vector<16x32xf32>
    %248 = arith.negf %247 : vector<16x32xf32>
    %249 = math.exp %248 : vector<16x32xf32>
    %cst_78 = arith.constant 1.000000e+00 : f32
    %250 = vector.broadcast %cst_78 : f32 to vector<16x32xf32>
    %251 = arith.addf %250, %249 : vector<16x32xf32>
    %252 = arith.divf %250, %251 : vector<16x32xf32>
    %253 = vector.extract_strided_slice %25 {offsets = [5, 0, 0], sizes = [1, 16, 32], strides = [1, 1, 1]} : vector<8x16x32xf32> to vector<1x16x32xf32>
    %254 = vector.shape_cast %253 : vector<1x16x32xf32> to vector<16x32xf32>
    %cst_79 = arith.constant dense<0.000000e+00> : vector<16x32xf32>
    %255 = tpu.matmul %234, %39, %cst_79 {dimension_numbers = #tpu.dot_dimension_numbers<[1], [0], [0], [1], [0, 0, 1, 1], [], []>} : vector<16x32xbf16>, vector<32x32xbf16>, vector<16x32xf32> -> vector<16x32xf32>
    %256 = arith.addf %254, %255 : vector<16x32xf32>
    %257 = math.tanh %256 : vector<16x32xf32>
    %258 = vector.extract_strided_slice %33 {offsets = [5, 0, 0], sizes = [1, 16, 32], strides = [1, 1, 1]} : vector<8x16x32xf32> to vector<1x16x32xf32>
    %259 = vector.shape_cast %258 : vector<1x16x32xf32> to vector<16x32xf32>
    %cst_80 = arith.constant dense<0.000000e+00> : vector<16x32xf32>
    %260 = tpu.matmul %234, %41, %cst_80 {dimension_numbers = #tpu.dot_dimension_numbers<[1], [0], [0], [1], [0, 0, 1, 1], [], []>} : vector<16x32xbf16>, vector<32x32xbf16>, vector<16x32xf32> -> vector<16x32xf32>
    %261 = arith.addf %259, %260 : vector<16x32xf32>
    %262 = arith.negf %261 : vector<16x32xf32>
    %263 = math.exp %262 : vector<16x32xf32>
    %cst_81 = arith.constant 1.000000e+00 : f32
    %264 = vector.broadcast %cst_81 : f32 to vector<16x32xf32>
    %265 = arith.addf %264, %263 : vector<16x32xf32>
    %266 = arith.divf %264, %265 : vector<16x32xf32>
    %267 = arith.mulf %252, %231 : vector<16x32xf32>
    %268 = arith.mulf %243, %257 : vector<16x32xf32>
    %269 = arith.addf %267, %268 : vector<16x32xf32>
    %270 = math.tanh %269 : vector<16x32xf32>
    %271 = arith.mulf %266, %270 : vector<16x32xf32>
    %272 = arith.truncf %271 : vector<16x32xf32> to vector<16x32xbf16>
    %273 = vector.extract_strided_slice %9 {offsets = [6, 0, 0], sizes = [1, 16, 32], strides = [1, 1, 1]} : vector<8x16x32xf32> to vector<1x16x32xf32>
    %274 = vector.shape_cast %273 : vector<1x16x32xf32> to vector<16x32xf32>
    %cst_82 = arith.constant dense<0.000000e+00> : vector<16x32xf32>
    %275 = tpu.matmul %272, %35, %cst_82 {dimension_numbers = #tpu.dot_dimension_numbers<[1], [0], [0], [1], [0, 0, 1, 1], [], []>} : vector<16x32xbf16>, vector<32x32xbf16>, vector<16x32xf32> -> vector<16x32xf32>
    %276 = arith.addf %274, %275 : vector<16x32xf32>
    %277 = arith.negf %276 : vector<16x32xf32>
    %278 = math.exp %277 : vector<16x32xf32>
    %cst_83 = arith.constant 1.000000e+00 : f32
    %279 = vector.broadcast %cst_83 : f32 to vector<16x32xf32>
    %280 = arith.addf %279, %278 : vector<16x32xf32>
    %281 = arith.divf %279, %280 : vector<16x32xf32>
    %282 = vector.extract_strided_slice %17 {offsets = [6, 0, 0], sizes = [1, 16, 32], strides = [1, 1, 1]} : vector<8x16x32xf32> to vector<1x16x32xf32>
    %283 = vector.shape_cast %282 : vector<1x16x32xf32> to vector<16x32xf32>
    %cst_84 = arith.constant dense<0.000000e+00> : vector<16x32xf32>
    %284 = tpu.matmul %272, %37, %cst_84 {dimension_numbers = #tpu.dot_dimension_numbers<[1], [0], [0], [1], [0, 0, 1, 1], [], []>} : vector<16x32xbf16>, vector<32x32xbf16>, vector<16x32xf32> -> vector<16x32xf32>
    %285 = arith.addf %283, %284 : vector<16x32xf32>
    %286 = arith.negf %285 : vector<16x32xf32>
    %287 = math.exp %286 : vector<16x32xf32>
    %cst_85 = arith.constant 1.000000e+00 : f32
    %288 = vector.broadcast %cst_85 : f32 to vector<16x32xf32>
    %289 = arith.addf %288, %287 : vector<16x32xf32>
    %290 = arith.divf %288, %289 : vector<16x32xf32>
    %291 = vector.extract_strided_slice %25 {offsets = [6, 0, 0], sizes = [1, 16, 32], strides = [1, 1, 1]} : vector<8x16x32xf32> to vector<1x16x32xf32>
    %292 = vector.shape_cast %291 : vector<1x16x32xf32> to vector<16x32xf32>
    %cst_86 = arith.constant dense<0.000000e+00> : vector<16x32xf32>
    %293 = tpu.matmul %272, %39, %cst_86 {dimension_numbers = #tpu.dot_dimension_numbers<[1], [0], [0], [1], [0, 0, 1, 1], [], []>} : vector<16x32xbf16>, vector<32x32xbf16>, vector<16x32xf32> -> vector<16x32xf32>
    %294 = arith.addf %292, %293 : vector<16x32xf32>
    %295 = math.tanh %294 : vector<16x32xf32>
    %296 = vector.extract_strided_slice %33 {offsets = [6, 0, 0], sizes = [1, 16, 32], strides = [1, 1, 1]} : vector<8x16x32xf32> to vector<1x16x32xf32>
    %297 = vector.shape_cast %296 : vector<1x16x32xf32> to vector<16x32xf32>
    %cst_87 = arith.constant dense<0.000000e+00> : vector<16x32xf32>
    %298 = tpu.matmul %272, %41, %cst_87 {dimension_numbers = #tpu.dot_dimension_numbers<[1], [0], [0], [1], [0, 0, 1, 1], [], []>} : vector<16x32xbf16>, vector<32x32xbf16>, vector<16x32xf32> -> vector<16x32xf32>
    %299 = arith.addf %297, %298 : vector<16x32xf32>
    %300 = arith.negf %299 : vector<16x32xf32>
    %301 = math.exp %300 : vector<16x32xf32>
    %cst_88 = arith.constant 1.000000e+00 : f32
    %302 = vector.broadcast %cst_88 : f32 to vector<16x32xf32>
    %303 = arith.addf %302, %301 : vector<16x32xf32>
    %304 = arith.divf %302, %303 : vector<16x32xf32>
    %305 = arith.mulf %290, %269 : vector<16x32xf32>
    %306 = arith.mulf %281, %295 : vector<16x32xf32>
    %307 = arith.addf %305, %306 : vector<16x32xf32>
    %308 = math.tanh %307 : vector<16x32xf32>
    %309 = arith.mulf %304, %308 : vector<16x32xf32>
    %310 = arith.truncf %309 : vector<16x32xf32> to vector<16x32xbf16>
    %311 = vector.extract_strided_slice %9 {offsets = [7, 0, 0], sizes = [1, 16, 32], strides = [1, 1, 1]} : vector<8x16x32xf32> to vector<1x16x32xf32>
    %312 = vector.shape_cast %311 : vector<1x16x32xf32> to vector<16x32xf32>
    %cst_89 = arith.constant dense<0.000000e+00> : vector<16x32xf32>
    %313 = tpu.matmul %310, %35, %cst_89 {dimension_numbers = #tpu.dot_dimension_numbers<[1], [0], [0], [1], [0, 0, 1, 1], [], []>} : vector<16x32xbf16>, vector<32x32xbf16>, vector<16x32xf32> -> vector<16x32xf32>
    %314 = arith.addf %312, %313 : vector<16x32xf32>
    %315 = arith.negf %314 : vector<16x32xf32>
    %316 = math.exp %315 : vector<16x32xf32>
    %cst_90 = arith.constant 1.000000e+00 : f32
    %317 = vector.broadcast %cst_90 : f32 to vector<16x32xf32>
    %318 = arith.addf %317, %316 : vector<16x32xf32>
    %319 = arith.divf %317, %318 : vector<16x32xf32>
    %320 = vector.extract_strided_slice %17 {offsets = [7, 0, 0], sizes = [1, 16, 32], strides = [1, 1, 1]} : vector<8x16x32xf32> to vector<1x16x32xf32>
    %321 = vector.shape_cast %320 : vector<1x16x32xf32> to vector<16x32xf32>
    %cst_91 = arith.constant dense<0.000000e+00> : vector<16x32xf32>
    %322 = tpu.matmul %310, %37, %cst_91 {dimension_numbers = #tpu.dot_dimension_numbers<[1], [0], [0], [1], [0, 0, 1, 1], [], []>} : vector<16x32xbf16>, vector<32x32xbf16>, vector<16x32xf32> -> vector<16x32xf32>
    %323 = arith.addf %321, %322 : vector<16x32xf32>
    %324 = arith.negf %323 : vector<16x32xf32>
    %325 = math.exp %324 : vector<16x32xf32>
    %cst_92 = arith.constant 1.000000e+00 : f32
    %326 = vector.broadcast %cst_92 : f32 to vector<16x32xf32>
    %327 = arith.addf %326, %325 : vector<16x32xf32>
    %328 = arith.divf %326, %327 : vector<16x32xf32>
    %329 = vector.extract_strided_slice %25 {offsets = [7, 0, 0], sizes = [1, 16, 32], strides = [1, 1, 1]} : vector<8x16x32xf32> to vector<1x16x32xf32>
    %330 = vector.shape_cast %329 : vector<1x16x32xf32> to vector<16x32xf32>
    %cst_93 = arith.constant dense<0.000000e+00> : vector<16x32xf32>
    %331 = tpu.matmul %310, %39, %cst_93 {dimension_numbers = #tpu.dot_dimension_numbers<[1], [0], [0], [1], [0, 0, 1, 1], [], []>} : vector<16x32xbf16>, vector<32x32xbf16>, vector<16x32xf32> -> vector<16x32xf32>
    %332 = arith.addf %330, %331 : vector<16x32xf32>
    %333 = math.tanh %332 : vector<16x32xf32>
    %334 = vector.extract_strided_slice %33 {offsets = [7, 0, 0], sizes = [1, 16, 32], strides = [1, 1, 1]} : vector<8x16x32xf32> to vector<1x16x32xf32>
    %335 = vector.shape_cast %334 : vector<1x16x32xf32> to vector<16x32xf32>
    %cst_94 = arith.constant dense<0.000000e+00> : vector<16x32xf32>
    %336 = tpu.matmul %310, %41, %cst_94 {dimension_numbers = #tpu.dot_dimension_numbers<[1], [0], [0], [1], [0, 0, 1, 1], [], []>} : vector<16x32xbf16>, vector<32x32xbf16>, vector<16x32xf32> -> vector<16x32xf32>
    %337 = arith.addf %335, %336 : vector<16x32xf32>
    %338 = arith.negf %337 : vector<16x32xf32>
    %339 = math.exp %338 : vector<16x32xf32>
    %cst_95 = arith.constant 1.000000e+00 : f32
    %340 = vector.broadcast %cst_95 : f32 to vector<16x32xf32>
    %341 = arith.addf %340, %339 : vector<16x32xf32>
    %342 = arith.divf %340, %341 : vector<16x32xf32>
    %343 = arith.mulf %328, %307 : vector<16x32xf32>
    %344 = arith.mulf %319, %333 : vector<16x32xf32>
    %345 = arith.addf %343, %344 : vector<16x32xf32>
    %346 = math.tanh %345 : vector<16x32xf32>
    %347 = arith.mulf %342, %346 : vector<16x32xf32>
    %348 = vector.extract_strided_slice %347 {offsets = [0, 0], sizes = [8, 32], strides = [1, 1]} : vector<16x32xf32> to vector<8x32xf32>
    %349 = vector.extract_strided_slice %347 {offsets = [8, 0], sizes = [8, 32], strides = [1, 1]} : vector<16x32xf32> to vector<8x32xf32>
    %c0_96 = arith.constant 0 : index
    %c0_97 = arith.constant 0 : index
    %350 = vector.load %arg2[%c0_96, %c0_97] : memref<8x32xf32, #tpu.memory_space<vmem>>, vector<8x32xf32>
    %351 = arith.truncf %348 : vector<8x32xf32> to vector<8x32xbf16>
    %c0_98 = arith.constant 0 : index
    %c0_99 = arith.constant 0 : index
    %352 = vector.load %arg8[%c0_98, %c0_99] : memref<32x32xbf16, #tpu.memory_space<vmem>>, vector<32x32xbf16>
    %cst_100 = arith.constant dense<0.000000e+00> : vector<8x32xf32>
    %353 = tpu.matmul %351, %352, %cst_100 {dimension_numbers = #tpu.dot_dimension_numbers<[1], [0], [0], [1], [0, 0, 1, 1], [], []>} : vector<8x32xbf16>, vector<32x32xbf16>, vector<8x32xf32> -> vector<8x32xf32>
    %354 = arith.mulf %353, %349 : vector<8x32xf32>
    %cst_101 = arith.constant dense<0.000000e+00> : vector<8xf32>
    %355 = vector.multi_reduction <add>, %354, %cst_101 [1] : vector<8x32xf32> to vector<8xf32>
    %356 = vector.shape_cast %355 : vector<8xf32> to vector<8x1xf32>
    %c0_102 = arith.constant 0 : index
    %c0_103 = arith.constant 0 : index
    %357 = memref.load %arg9[%c0_102, %c0_103] : memref<1x1xf32, #tpu.memory_space<smem>>
    %358 = vector.broadcast %357 : f32 to vector<8x1xf32>
    %359 = arith.addf %356, %358 : vector<8x1xf32>
    %360 = arith.mulf %348, %350 : vector<8x32xf32>
    %cst_104 = arith.constant dense<0.000000e+00> : vector<8xf32>
    %361 = vector.multi_reduction <add>, %360, %cst_104 [1] : vector<8x32xf32> to vector<8xf32>
    %362 = vector.shape_cast %361 : vector<8xf32> to vector<8x1xf32>
    %363 = arith.mulf %348, %348 : vector<8x32xf32>
    %cst_105 = arith.constant dense<0.000000e+00> : vector<8xf32>
    %364 = vector.multi_reduction <add>, %363, %cst_105 [1] : vector<8x32xf32> to vector<8xf32>
    %365 = vector.shape_cast %364 : vector<8xf32> to vector<8x1xf32>
    %366 = arith.mulf %350, %350 : vector<8x32xf32>
    %cst_106 = arith.constant dense<0.000000e+00> : vector<8xf32>
    %367 = vector.multi_reduction <add>, %366, %cst_106 [1] : vector<8x32xf32> to vector<8xf32>
    %368 = vector.shape_cast %367 : vector<8xf32> to vector<8x1xf32>
    %369 = arith.mulf %365, %368 : vector<8x1xf32>
    %cst_107 = arith.constant 1.000000e-16 : f32
    %370 = vector.broadcast %cst_107 : f32 to vector<8x1xf32>
    %371 = arith.maximumf %369, %370 : vector<8x1xf32>
    %372 = math.rsqrt %371 : vector<8x1xf32>
    %373 = arith.mulf %362, %372 : vector<8x1xf32>
    %374 = arith.mulf %359, %373 : vector<8x1xf32>
    %c0_108 = arith.constant 0 : index
    %c0_109 = arith.constant 0 : index
    %375 = vector.load %arg10[%c0_108, %c0_109] : memref<8x1xf32, #tpu.memory_space<vmem>>, vector<8x1xf32>
    tpu.vector_store %arg10[%c0_108, %c0_109], %374 {strides = array<i32>} : memref<8x1xf32, #tpu.memory_space<vmem>>, vector<8x1xf32>,
    %c0_110 = arith.constant 0 : index
    %c0_111 = arith.constant 0 : index
    %376 = vector.load %arg3[%c0_110, %c0_111] : memref<8x16xbf16, #tpu.memory_space<vmem>>, vector<8x16xbf16>
    %c0_112 = arith.constant 0 : index
    %c0_113 = arith.constant 0 : index
    %377 = vector.load %arg4[%c0_112, %c0_113] : memref<16x32xbf16, #tpu.memory_space<vmem>>, vector<16x32xbf16>
    %cst_114 = arith.constant dense<0.000000e+00> : vector<8x32xf32>
    %378 = tpu.matmul %376, %377, %cst_114 {dimension_numbers = #tpu.dot_dimension_numbers<[1], [0], [0], [1], [0, 0, 1, 1], [], []>} : vector<8x16xbf16>, vector<16x32xbf16>, vector<8x32xf32> -> vector<8x32xf32>
    %379 = arith.subf %350, %378 : vector<8x32xf32>
    %380 = arith.mulf %379, %379 : vector<8x32xf32>
    %cst_115 = arith.constant dense<0.000000e+00> : vector<8xf32>
    %381 = vector.multi_reduction <add>, %380, %cst_115 [1] : vector<8x32xf32> to vector<8xf32>
    %382 = vector.shape_cast %381 : vector<8xf32> to vector<8x1xf32>
    %cst_116 = arith.constant 1.000000e-24 : f32
    %383 = vector.broadcast %cst_116 : f32 to vector<8x1xf32>
    %384 = arith.maximumf %382, %383 : vector<8x1xf32>
    %385 = math.rsqrt %384 : vector<8x1xf32>
    %386 = vector.broadcast %385 : vector<8x1xf32> to vector<8x32xf32>
    %387 = arith.mulf %379, %386 : vector<8x32xf32>
    %c0_117 = arith.constant 0 : index
    %c0_118 = arith.constant 0 : index
    %388 = vector.load %arg11[%c0_117, %c0_118] : memref<8x32xf32, #tpu.memory_space<vmem>>, vector<8x32xf32>
    tpu.vector_store %arg11[%c0_117, %c0_118], %387 {strides = array<i32>} : memref<8x32xf32, #tpu.memory_space<vmem>>, vector<8x32xf32>,
    return
  }
  func.func @transform_0(%arg0: i32) -> (i32, i32, i32) {
    %c0_i32 = arith.constant 0 : i32
    %c0_i32_0 = arith.constant 0 : i32
    %c0_i32_1 = arith.constant 0 : i32
    return %c0_i32, %arg0, %c0_i32_0 : i32, i32, i32
  }
  func.func @transform_1(%arg0: i32) -> (i32, i32) {
    %c0_i32 = arith.constant 0 : i32
    %c0_i32_0 = arith.constant 0 : i32
    return %arg0, %c0_i32 : i32, i32
  }
  func.func @transform_2(%arg0: i32) -> (i32, i32) {
    %c0_i32 = arith.constant 0 : i32
    %c0_i32_0 = arith.constant 0 : i32
    return %arg0, %c0_i32 : i32, i32
  }
  func.func @transform_3(%arg0: i32) -> (i32, i32) {
    %c0_i32 = arith.constant 0 : i32
    %c0_i32_0 = arith.constant 0 : i32
    %c0_i32_1 = arith.constant 0 : i32
    return %c0_i32, %c0_i32_0 : i32, i32
  }
  func.func @transform_4(%arg0: i32) -> (i32, i32, i32) {
    %c0_i32 = arith.constant 0 : i32
    %c0_i32_0 = arith.constant 0 : i32
    %c0_i32_1 = arith.constant 0 : i32
    %c0_i32_2 = arith.constant 0 : i32
    return %c0_i32, %c0_i32_0, %c0_i32_1 : i32, i32, i32
  }
  func.func @transform_5(%arg0: i32) -> (i32, i32, i32) {
    %c0_i32 = arith.constant 0 : i32
    %c0_i32_0 = arith.constant 0 : i32
    %c0_i32_1 = arith.constant 0 : i32
    %c0_i32_2 = arith.constant 0 : i32
    return %c0_i32, %c0_i32_0, %c0_i32_1 : i32, i32, i32
  }
  func.func @transform_6(%arg0: i32) -> (i32, i32, i32) {
    %c0_i32 = arith.constant 0 : i32
    %c0_i32_0 = arith.constant 0 : i32
    %c0_i32_1 = arith.constant 0 : i32
    %c0_i32_2 = arith.constant 0 : i32
    return %c0_i32, %c0_i32_0, %c0_i32_1 : i32, i32, i32
  }
  func.func @transform_7(%arg0: i32) -> (i32, i32) {
    %c0_i32 = arith.constant 0 : i32
    %c0_i32_0 = arith.constant 0 : i32
    %c0_i32_1 = arith.constant 0 : i32
    return %c0_i32, %c0_i32_0 : i32, i32
  }
  func.func @transform_8(%arg0: i32) -> (i32, i32) {
    %c0_i32 = arith.constant 0 : i32
    %c0_i32_0 = arith.constant 0 : i32
    %c0_i32_1 = arith.constant 0 : i32
    return %c0_i32, %c0_i32_0 : i32, i32
  }
  func.func @transform_9(%arg0: i32) -> (i32, i32) {
    %c0_i32 = arith.constant 0 : i32
    %c0_i32_0 = arith.constant 0 : i32
    return %arg0, %c0_i32 : i32, i32
  }
  func.func @transform_10(%arg0: i32) -> (i32, i32) {
    %c0_i32 = arith.constant 0 : i32
    %c0_i32_0 = arith.constant 0 : i32
    return %arg0, %c0_i32 : i32, i32
  }
}

</mosaic_0001>

<bundles_post_ra>
// kernel: tpu_custom_call.1
= control target key start
LH: loop header
LB: loop body
LE: loop exit
PB: predicated region body
PF: predicated region fallthrough
CT: control target
= control target key end

     0   :  { %s5508_s0 = inlined_call_operand.hbm [shape: bf16[8,32,32], index: 0, kind: input, shape index: {}]   ;;  %s5509_s1 = inlined_call_operand.hbm [shape: f32[16,32], index: 1, kind: input, shape index: {}]   ;;  %s5510_s2 = inlined_call_operand.vmem [shape: bf16[16,16], index: 2, kind: input, shape index: {}]   ;;  %s5511_s3 = inlined_call_operand.hbm [shape: bf16[16,32], index: 3, kind: input, shape index: {}]   ;;  %s5512_s4 = inlined_call_operand.hbm [shape: bf16[4,32,32], index: 4, kind: input, shape index: {}]   ;;  %s5513_s5 = inlined_call_operand.hbm [shape: bf16[4,32,32], index: 5, kind: input, shape index: {}]   ;;  %s5514_s6 = inlined_call_operand.vmem [shape: f32[4,1,32], index: 6, kind: input, shape index: {}]   ;;  %s5515_s7 = inlined_call_operand.vmem [shape: bf16[32,32], index: 7, kind: input, shape index: {}]   ;;  %s5516_s8 = inlined_call_operand.<no memory space> [shape: f32[1,1], index: 8, kind: input, shape index: {}]   ;;  %s5517_s9 = inlined_call_operand.vmem [shape: f32[16,1], index: 9, kind: output, shape index: {0}]   ;;  %s5518_s10 = inlined_call_operand.hbm [shape: f32[16,32], index: 10, kind: output, shape index: {1}]  }
   0x1   :  { %5532 = sst [smem:[#allocation54_spill]] %s5512_s4 }
   0x2   :  { %5533 = sst [smem:[#allocation55_spill]] %s5517_s9 }
   0x3   :  { %5534 = sst [smem:[#allocation56_spill]] %s5518_s10 }
   0x4   :  { %16 = sst [smem:[#allocation2]] %s5516_s8 }
   0x5   :  { %17 = vsyncpa [#allocation4], 0 }
   0x6   :  { %19 = vsyncpa [#allocation4 + $0x1], 0 }
   0x7   :  { %20 = vsyncpa [#allocation7], 0 }
   0x8   :  { %22 = vsyncpa [#allocation7 + $0x1], 0 }
   0x9   :  { %23 = vsyncpa [#allocation10], 0 }
   0xa   :  { %24 = vsyncpa [#allocation5], 0 }
   0xb   :  { %26 = vsyncpa [#allocation5 + $0x1], 0  ;;  %s4581_s15 = smov 0   ;;  %s4583_s16 = smov 0  }
   0xc   :  { %s4585_s17 = smov 0   ;;  %s4587_s18 = smov 0  }
   0xd LB: > { %5535 = sst [smem:[#allocation21_spill]] %s4493_s15  ;;  %s4602_s8 = sadd.s32 4294967295, %s4505_s18   ;;  %s4505_s18 = sphi %s4587_s18, %s5620_s18   ;;  %s4501_s17 = sphi %s4585_s17, %s5624_s17   ;;  %s4497_s16 = sphi %s4583_s16, %s5623_s16   ;;  %s4493_s15 = sphi %s4581_s15, %s5622_s15  }
   0xe   : > { %s3266_s19 = sadd.s32 4294967294, %s4505_s18   ;;  %s4606_s20 = sadd.s32 1, %s4505_s18  }
   0xf   : > { %5536 = sst [smem:[#allocation22_spill]] %s4606_s20  ;;  %s39_s21 = sadd.s32 1, %s4501_s17 }
  0x10   : > { %s36_s22 = ssub.s32 %s4505_s18, %s4606_s20  ;;  %p46_p0 = scmp.ne.s32.totalorder %s4501_s17, %s4497_s16 }
  0x11   : > { %p37_p1 = scmp.eq.s32.totalorder %s36_s22, 0  ;;  %p47_p2 = scmp.eq.s32.totalorder %s4505_s18, 0 }
  0x12   : > { %p52_p3 = scmp.ne.s32.totalorder %s4497_s16, %s4493_s15  ;;  %p5521_p4 = scmp.eq.s32.totalorder %s4602_s8, 0 }
  0x13   : > { %s4618_s23 = scalar_select %p37_p1, %s4501_s17, %s39_s21  }
  0x14   : > { %p4620_p5 = por %p47_p2, %p46_p0  ;;  %p4626_p6 = por %p5521_p4, %p52_p3 }
  0x15   : > { %5537 = sst [smem:[#allocation23_spill]] %s4618_s23  ;;  %p280_p7 = scmp.eq.s32.totalorder %s4602_s8, 1 }
  0x16   : > { %s5538_s24 = scalar_select %p4620_p5, 1, 0 }
  0x17   : > { %s5539_s25 = scalar_select %p4626_p6, 1, 0 }
  0x18   : > { %p286_p8 = scmp.eq.s32.totalorder %s3266_s19, 1  ;;  %p3267_p9 = scmp.ge.s32.totalorder %s4505_s18, 1 }
  0x19   : > { %p293_p10 = scmp.lt.s32.totalorder %s4505_s18, 3  ;;  %p4633_p11 = por %p280_p7, %p46_p0 }
  0x1a   : > { %p4637_p12 = por %p286_p8, %p52_p3  ;;  %s4507_s29 = smov [#allocation9]  }
  0x1b   : > { %s5540_s26 = scalar_select %p4633_p11, 1, 0 }
  0x1c   : > { %s5541_s27 = scalar_select %p4637_p12, 1, 0 }
  0x1d   : > { %p4641_p13 = pnand %p3267_p9, %p293_p10  ;;  %s318_s30 = sshll.u32 %s4507_s29, 4  ;;  %s319_s30 = int_to_ptr.vmem [resolvable:$true] %s318_s30 }
  0x1e   : > { %5542 = sst [smem:[#allocation24_spill]] %s5541_s27  ;;  %s4508_s12 = smov [#allocation8]  }
  0x1f   : > { %s5543_s28 = scalar_select %p4641_p13, 1, 0 }
  0x20   : > { %p3953_p1 = pneg %p4641_p13  ;;  %s305_s13 = sshll.u32 %s4508_s12, 4  ;;  %s4653_s13 = int_to_ptr.vmem [resolvable:$true] %s305_s13 }
  0x21   : > { %s5545_s4 = sld [smem:[#allocation54_spill]] }
  0x22   : > { %p4649_p2 = pnand %p3953_p1, %p5521_p4 }
  0x24   : > { %p4663_p3 = pneg %p4649_p2 }
  0x27   : > { %s4315_s21 = scalar_lea.hbm %s5545_s4, 1024 }
  0x28   : > { %p4316_p0 = scmp.ne.s32.totalorder %s5545_s4, %s4315_s21  ;;  %p4322_p9 = scmp.lt.u32.totalorder %s4315_s21, %s5545_s4 }
  0x2a   : > { %p4318_p7 = pnand %p4663_p3, %p4316_p0 }
  0x2c   : > { %p4319_p8 = pneg %p4318_p7 }
  0x2e   : > { %p4324_p10 = pnand %p4322_p9, %p4319_p8 }
  0x30   : > { %4327 = shalt.err (!%p4324_p10)
}
  0x31   : > { %s4328_s14 = scalar_lea.vmem %s319_s30, 1024  ;;  %p4336_p11 = scmp.lt.s32.totalorder %s319_s30, %s319_s30 }
  0x32   : > { %p4329_p1 = scmp.ne.s32.totalorder %s319_s30, %s4328_s14  ;;  %p4337_p6 = scmp.lt.s32.totalorder %s4328_s14, %s4328_s14 }
  0x34   : > { %p4331_p4 = pnand %p4329_p1, %p4663_p3  ;;  %p4338_p13 = por %p4337_p6, %p4336_p11 }
  0x36   : > { %p4332_p12 = pneg %p4331_p4 }
  0x38   : > { %p4339_p5 = pnand %p4338_p13, %p4332_p12 }
  0x3a   : > { %4342 = shalt.err (!%p4339_p5)
}
  0x3b   : > { %s4509_s23 = smov 64   ;;  %s4510_s19 = smov 4  }
  0x3c   : > { %3959 = dma.hbm_to_vmem [thread:$0]  (!%p4649_p2), %s5545_s4, 1024, %s319_s30, [#allocation10], %s4509_s23, %s4509_s23, %s4510_s19  }
  0x3d   : > { %s4343_s27 = scalar_lea.hbm %s5511_s3, 128 }
  0x3e   : > { %p4344_p4 = scmp.ne.s32.totalorder %s5511_s3, %s4343_s27  ;;  %p4350_p11 = scmp.lt.u32.totalorder %s4343_s27, %s5511_s3 }
  0x40   : > { %p4346_p5 = pnand %p4344_p4, %p4663_p3 }
  0x42   : > { %p4347_p6 = pneg %p4346_p5 }
  0x44   : > { %p4352_p12 = pnand %p4350_p11, %p4347_p6 }
  0x46   : > { %4355 = shalt.err (!%p4352_p12)
}
  0x47   : > { %s4356_s30 = scalar_lea.vmem %s4653_s13, 128  ;;  %p4364_p8 = scmp.lt.s32.totalorder %s4653_s13, %s4653_s13 }
  0x48   : > { %p4357_p13 = scmp.ne.s32.totalorder %s4653_s13, %s4356_s30  ;;  %p4365_p9 = scmp.lt.s32.totalorder %s4356_s30, %s4356_s30 }
  0x4a   : > { %p4359_p0 = pnand %p4357_p13, %p4663_p3  ;;  %p4366_p10 = por %p4365_p9, %p4364_p8 }
  0x4c   : > { %p4360_p7 = pneg %p4359_p0 }
  0x4e   : > { %p4367_p1 = pnand %p4366_p10, %p4360_p7 }
  0x50   : > { %4370 = shalt.err (!%p4367_p1)
}
  0x51   : > { %3956 = dma.hbm_to_vmem [thread:$0]  (!%p4649_p2), %s5511_s3, 128, %s4653_s13, [#allocation7], %s4509_s23, %s4509_s23, %s4510_s19  }
  0x52   : > { %s4511_s15 = smov [#allocation11]   ;;  %s4371_s22 = scalar_lea.hbm %s5513_s5, 1024 }
  0x53   : > { %s331_s27 = sshll.u32 %s4511_s15, 4  ;;  %p4372_p4 = scmp.ne.s32.totalorder %s5513_s5, %s4371_s22  ;;  %s332_s27 = int_to_ptr.vmem [resolvable:$true] %s331_s27 }
  0x54   : > { %p4378_p11 = scmp.lt.u32.totalorder %s4371_s22, %s5513_s5 }
  0x55   : > { %p4374_p5 = pnand %p4372_p4, %p4663_p3 }
  0x57   : > { %p4375_p6 = pneg %p4374_p5 }
  0x59   : > { %p4380_p12 = pnand %p4378_p11, %p4375_p6 }
  0x5b   : > { %4383 = shalt.err (!%p4380_p12)
}
  0x5c   : > { %s4384_s13 = scalar_lea.vmem %s332_s27, 1024  ;;  %p4392_p8 = scmp.lt.s32.totalorder %s332_s27, %s332_s27 }
  0x5d   : > { %p4385_p13 = scmp.ne.s32.totalorder %s332_s27, %s4384_s13  ;;  %p4393_p9 = scmp.lt.s32.totalorder %s4384_s13, %s4384_s13 }
  0x5f   : > { %p4387_p0 = pnand %p4385_p13, %p4663_p3  ;;  %p4394_p10 = por %p4393_p9, %p4392_p8 }
  0x61   : > { %p4388_p7 = pneg %p4387_p0 }
  0x63   : > { %p4395_p1 = pnand %p4394_p10, %p4388_p7 }
  0x65   : > { %4398 = shalt.err (!%p4395_p1)
}
  0x66   : > { %3962 = dma.hbm_to_vmem [thread:$0]  (!%p4649_p2), %s5513_s5, 1024, %s332_s27, [#allocation10], %s4509_s23, %s4509_s23, %s4510_s19  }
  0x67   : > { %p5529_p4 = scmp.ge.s32.totalorder %s4505_s18, 2 }
  0x69   : > { %350 = sbr.rel (%p5529_p4) target bundleno = 150 (0x96), region = 40 }
  0x70   : > { %s354_s29 = sand.u32 1, %s4501_s17   ;;  %s3436_s11 = sshll.u32 %s4505_s18, 7 }
  0x71   : > { %s3272_s10 = sshll.u32 %s354_s29, 6  ;;  %s364_s23 = scalar_lea.hbm %s5508_s0, %s3436_s11 }
  0x72   : > { %p5547_p2 = scmp.ne.s32.totalorder %s5538_s24, 0  ;;  %s358_s27 = scalar_lea.vmem [#allocation3], %s3272_s10 }
  0x73   : > { %s377_s21 = sshll.u32 %s358_s27, 4  ;;  %s4512_s12 = smov 256   ;;  %s378_s21 = int_to_ptr.vmem [resolvable:$true] %s377_s21 }
  0x74   : > { %s3934_s19 = scalar_select %p5547_p2, [#allocation0], [#allocation15] }
  0x75   : > { %3935 = sst [smem:[#allocation14]] (%p5547_p2), %s4512_s12  ;;  %s4513_s14 = smov 128  }
  0x76   : > { %s369_s22 = sld [smem:[%s3934_s19]]   ;;  %s4514_s30 = smov 2  }
  0x77   : > { %3936 = sst [smem:[#allocation14 + $0x1]] (%p5547_p2), %s4513_s14  ;;  %s4515_s13 = smov 64  }
  0x78   : > { %3937 = sst [smem:[#allocation14 + $0x2]] (%p5547_p2), %s4514_s30  ;;  %s4516_s9 = smov 4  }
  0x79   : > { %3938 = sst [smem:[#allocation14 + $0x3]] (%p5547_p2), %s4515_s13  ;;  %s355_s15 = scalar_lea.sflag [#allocation4], %s354_s29 }
  0x7a   : > { %3939 = sst [smem:[#allocation14 + $0x4]] (%p5547_p2), %s4515_s13  ;;  %s4517_s20 = smov [#allocation13]  }
  0x7b   : > { %3940 = sst [smem:[#allocation14 + $0x5]] (%p5547_p2), %s4516_s9  ;;  %s400_s19 = sand.u32 1, %s4505_s18  }
  0x7c   : > { %s3275_s4 = sshll.u32 %s369_s22, 26  ;;  %s3277_s27 = sshll.u32 %s354_s29, 3 }
  0x7d   : > { %s3276_s10 = sadd.s32 134217728, %s3275_s4  ;;  %s4757_s30 = scalar_lea.hbm %s5509_s1, %s3436_s11 }
  0x7e   : > { %3941 = dma.general (%p5547_p2), %s364_s23, 1024, %s378_s21, %s355_s15, %s4517_s20, [#allocation14], %s3276_s10, 0  }
  0x7f   : > { %s404_s22 = scalar_lea.vmem [#allocation6], %s3277_s27  ;;  %s401_s4 = scalar_lea.sflag [#allocation7], %s400_s19 }
  0x80   : > { %s411_s13 = sshll.u32 %s404_s22, 4  ;;  %s4399_s9 = scalar_lea.hbm %s4757_s30, 128  ;;  %s412_s13 = int_to_ptr.vmem [resolvable:$true] %s411_s13 }
  0x81   : > { %p4400_p3 = scmp.ne.s32.totalorder %s4757_s30, %s4399_s9  ;;  %s4403_s21 = scalar_lea.hbm %s5509_s1, 256 }
  0x82   : > { %p4404_p11 = scmp.lt.u32.totalorder %s4757_s30, %s5509_s1  ;;  %p4405_p12 = scmp.lt.u32.totalorder %s4403_s21, %s4399_s9 }
  0x83   : > { %p4401_p5 = pnand %p4400_p3, %p5547_p2  ;;  %p4407_p0 = scmp.lt.u32.totalorder %s4399_s9, %s4757_s30 }
  0x84   : > { %p4406_p13 = por %p4405_p12, %p4404_p11 }
  0x85   : > { %p4402_p6 = pneg %p4401_p5 }
  0x86   : > { %p4408_p7 = por %p4407_p0, %p4406_p13 }
  0x88   : > { %p4409_p8 = pnand %p4408_p7, %p4402_p6 }
  0x8a   : > { %4412 = shalt.err (!%p4409_p8)
}
  0x8b   : > { %s4413_s15 = scalar_lea.vmem %s412_s13, 128  ;;  %s4518_s20 = smov [#allocation6]  }
  0x8c   : > { %p4414_p9 = scmp.ne.s32.totalorder %s412_s13, %s4413_s15  ;;  %s4417_s19 = sshll.u32 %s4518_s20, 4  ;;  %s4418_s19 = int_to_ptr.vmem [resolvable:$false] %s4417_s19 }
  0x8d   : > { %s4419_s27 = scalar_lea.vmem %s4418_s19, 256  ;;  %p4420_p3 = scmp.lt.s32.totalorder %s412_s13, %s4418_s19 }
  0x8e   : > { %p4415_p10 = pnand %p4414_p9, %p5547_p2  ;;  %p4421_p5 = scmp.lt.s32.totalorder %s4419_s27, %s4413_s15 }
  0x90   : > { %p4416_p1 = pneg %p4415_p10  ;;  %p4422_p4 = por %p4421_p5, %p4420_p3 }
  0x92   : > { %p4423_p11 = pnand %p4422_p4, %p4416_p1 }
  0x94   : > { %4426 = shalt.err (!%p4423_p11)
}
  0x95   : > { %3942 = dma.hbm_to_vmem [thread:$0]  (%p5547_p2), %s4757_s30, 128, %s412_s13, %s401_s4  }
  0x96 PF: > { %p5548_p6 = scmp.ne.s32.totalorder %s5543_s28, 0 }
  0x98   : > { %427 = sbr.rel (%p5548_p6) target bundleno = 2701 (0xa8d), region = 56 }
  0x9f   : > { %s4779_s12 = sand.u32 1, %s4497_s16   ;;  %p5549_p4 = scmp.ne.s32.totalorder %s5539_s25, 0 }
  0xa0   : > { %s3280_s14 = sshll.u32 %s4779_s12, 6  ;;  %s430_s22 = scalar_lea.sflag [#allocation4], %s4779_s12 }
  0xa1   : > { %s4783_s9 = scalar_lea.vmem [#allocation3], %s3280_s14 }
  0xa2   : > { %4472 = dma.done.wait (%p5549_p4), %s430_s22, 1024  }
  0xa3   : > { %4474 = vsyncadd (%p5549_p4), %s430_s22, 4294966272  ;;  %s438_s24 = sand.u32 1, %s4602_s8   ;;  %s3281_s28 = sshll.u32 %s4779_s12, 3 }
  0xa4   : > { %s439_s30 = scalar_lea.sflag [#allocation7], %s438_s24  ;;  %s4793_s13 = scalar_lea.vmem [#allocation6], %s3281_s28 }
  0xa5   : > { %4476 = dma.done.wait (%p5549_p4), %s439_s30, 128  }
  0xa6   : > { %4478 = vsyncadd (%p5549_p4), %s439_s30, 4294967168  ;;  %p5550_p2 = scmp.eq.s32.totalorder %s4602_s8, 0 }
  0xa8   : > { %4480 = dma.done.wait (%p5550_p2), [#allocation7], 128   ;;  %p5551_p12 = pmov %p5550_p2 }
  0xa9   : > { %p5552_p13 = pmov %p5550_p2 }
  0xaa   : > { %4482 = vsyncadd (%p5551_p12), [#allocation7], 4294967168 }
  0xab   : > { %4484 = dma.done.wait (%p5552_p13), [#allocation10], 2048   ;;  %p5553_p0 = pmov %p5550_p2 }
  0xac   : > { %v4020_v0 = vld [vmem:[#allocation9] sm:$0xff]   ;;  %v4021_v1 = vld [vmem:[#allocation9 + $0x10] sm:$0xff]   ;;  %v4022_v2 = vld [vmem:[#allocation9 + $0x8] sm:$0xff]   ;;  %vm593_vm0 = vcmask 261120   ;;  %v5530_v13 = vmov 0.0   ;;  %vm4520_vm1 = vmmov 0  }
  0xad   : > { %4486 = vsyncadd (%p5553_p0), [#allocation10], 4294965248  ;;  %3578 = vmatprep.subr.bf16.mxu0 %v4020_v0  ;;  %3598 = vmatprep.subr.bf16.mxu1 %v4021_v1  ;;  %v4023_v3 = vld [vmem:[#allocation9 + $0x18] sm:$0xff]   ;;  %v4024_v4 = vld [vmem:[%s4783_s9] sm:$0xff]   ;;  %v4521_v23 = vmov 0   ;;  %p505_p7 = scmp.lt.s32.totalorder %s4602_s8, 1 }
  0xae   : > { %3579 = vmatpush3.bf16.msra.mxu0 %v4020_v0  ;;  %3599 = vmatpush3.bf16.msra.mxu1 %v4021_v1  ;;  %v4025_v5 = vld [vmem:[%s4783_s9 + $0x8] sm:$0xff]   ;;  %v4026_v6 = vld [vmem:[#allocation9 + $0x20] sm:$0xff]   ;;  %v4028_v8 = vld [vmem:[%s4783_s9 + $0x10] sm:$0xff]   ;;  %vm3035_vm2 = vcmask 130048   ;;  %s3433_s4 = sshll.u32 %s4602_s8, 7  ;;  %s5613_s10 = sld [smem:[#allocation56_spill]] }
  0xaf   : > { %3580 = vmatprep.subr.bf16.mxu0 %v4022_v2  ;;  %3600 = vmatprep.subr.bf16.mxu1 %v4023_v3  ;;  %v4027_v7 = vld [vmem:[#allocation9 + $0x30] sm:$0xff]   ;;  %v4032_v9 = vld [vmem:[#allocation9 + $0x28] sm:$0xff]   ;;  %v4033_v10 = vld [vmem:[#allocation9 + $0x38] sm:$0xff]   ;;  %s5419_s20 = scalar_select %p505_p7, %s4602_s8, 1 }
  0xb0   : > { %3582 = vmatprep.mubr.msk.bf16.mxu0 %vm593_vm0, %v4024_v4  ;;  %3602 = vmatprep.mubr.msk.bf16.mxu1 %vm593_vm0, %v4024_v4  ;;  %v4029_v11 = vld [vmem:[%s4783_s9 + $0x18] sm:$0xff]   ;;  %v4030_v12 = vld [vmem:[%s4783_s9 + $0x20] sm:$0xff]   ;;  %v4031_v14 = vld [vmem:[%s4783_s9 + $0x28] sm:$0xff]   ;;  %p5614_p9 = scmp.ne.s32.totalorder %s5540_s26, 0 }
  0xb1   : > { %v4034_v15 = vld [vmem:[%s4783_s9 + $0x30] sm:$0xff]   ;;  %v4035_v16 = vld [vmem:[%s4783_s9 + $0x38] sm:$0xff]   ;;  %v4837_v18 = vld [vmem:[#allocation11 + $0x10] sm:$0xff]   ;;  %s3286_s19 = sshll.u32 %s5419_s20, 2 }
  0xb2   : > { %3581 = vmatpush3.bf16.msra.mxu0 %v4022_v2  ;;  %3601 = vmatpush3.bf16.msra.mxu1 %v4023_v3  ;;  %v4835_v17 = vld [vmem:[#allocation11] sm:$0xff]   ;;  %v4842_v19 = vld [vmem:[#allocation11 + $0x8] sm:$0xff]   ;;  %v4846_v20 = vld [vmem:[#allocation11 + $0x18] sm:$0xff]   ;;  %s508_s22 = scalar_lea.vmem %s5510_s2, %s3286_s19  ;;  %s4522_s19 = smov [#allocation12]  }
  0xb3   : > { %3618 = vmatprep.subr.bf16.mxu0 %v4026_v6  ;;  %3638 = vmatprep.subr.bf16.mxu1 %v4027_v7  ;;  %v4869_v21 = vld [vmem:[#allocation11 + $0x20] sm:$0xff]   ;;  %v4871_v22 = vld [vmem:[#allocation11 + $0x30] sm:$0xff]   ;;  %v4874_v24 = vld [vmem:[#allocation11 + $0x28] sm:$0xff]   ;;  %s4431_s27 = sshll.u32 %s4522_s19, 4  ;;  %s4432_s27 = int_to_ptr.vmem [resolvable:$false] %s4431_s27 }
  0xb4   : > { %v4878_v25 = vld [vmem:[#allocation11 + $0x38] sm:$0xff]   ;;  %v4904_v26 = vld [vmem:[%s5514_s6] ss:$0 sm:$0xff]  ;;  %v4909_v27 = vld [vmem:[%s5514_s6 + $0x1] ss:$0 sm:$0xff]  ;;  %s5466_s11 = scalar_lea.hbm %s5613_s10, %s3433_s4  ;;  %s4433_s14 = scalar_lea.vmem %s4432_s27, 256 }
  0xb5   : > { %3583 = vmatmul.mubr.msk.bf16.vlgmr.msra.gmra.mrb[0].mxu0 %vm593_vm0, %v4025_v5  ;;  %3603 = vmatmul.mubr.msk.bf16.vlgmr.msra.gmra.mrb[0].mxu1 %vm593_vm0, %v4025_v5 }
  0xb6   : > { %3619 = vmatpush3.bf16.msra.mxu0 %v4026_v6  ;;  %3639 = vmatpush3.bf16.msra.mxu1 %v4027_v7 }
  0xb7   : > { %3586 = vmatprep.mubr.msk.bf16.mxu0 %vm593_vm0, %v4028_v8  ;;  %3606 = vmatprep.mubr.msk.bf16.mxu1 %vm593_vm0, %v4028_v8 }
  0xb8   : > { %3620 = vmatprep.subr.bf16.mxu0 %v4032_v9  ;;  %3640 = vmatprep.subr.bf16.mxu1 %v4033_v10 }
  0xba   : > { %3621 = vmatpush3.bf16.msra.mxu0 %v4032_v9  ;;  %3641 = vmatpush3.bf16.msra.mxu1 %v4033_v10 }
  0xbb   : > { %3658 = vmatprep.subr.bf16.mxu0 %v5530_v13  ;;  %3666 = vmatprep.subr.bf16.mxu1 %v5530_v13 }
  0xbd   : > { %3587 = vmatmul.mubr.msk.bf16.gmra.mrb[4].mxu0 %vm593_vm0, %v4029_v11  ;;  %3607 = vmatmul.mubr.msk.bf16.gmra.mrb[4].mxu1 %vm593_vm0, %v4029_v11 }
  0xbe   : > { %3590 = vmatprep.mubr.msk.bf16.mxu0 %vm593_vm0, %v4030_v12  ;;  %3610 = vmatprep.mubr.msk.bf16.mxu1 %vm593_vm0, %v4030_v12 }
  0xc5   : > { %3591 = vmatmul.mubr.msk.bf16.gmra.mrb[8].mxu0 %vm593_vm0, %v4031_v14  ;;  %3611 = vmatmul.mubr.msk.bf16.gmra.mrb[8].mxu1 %vm593_vm0, %v4031_v14 }
  0xc6   : > { %3594 = vmatprep.mubr.msk.bf16.mxu0 %vm593_vm0, %v4034_v15  ;;  %3614 = vmatprep.mubr.msk.bf16.mxu1 %vm593_vm0, %v4034_v15 }
  0xcd   : > { %3595 = vmatmul.mubr.msk.bf16.gmra.mrb[12].mxu0 %vm593_vm0, %v4035_v16  ;;  %3615 = vmatmul.mubr.msk.bf16.gmra.mrb[12].mxu1 %vm593_vm0, %v4035_v16 }
  0xce   : > { %3622 = vmatprep.mubr.msk.bf16.mxu0 %vm593_vm0, %v4024_v4  ;;  %3642 = vmatprep.mubr.msk.bf16.mxu1 %vm593_vm0, %v4024_v4 }
  0xd5   : > { %3623 = vmatmul.mubr.msk.bf16.vlgmr.msra.gmra.mrb[16].mxu0 %vm593_vm0, %v4025_v5  ;;  %3643 = vmatmul.mubr.msk.bf16.vlgmr.msra.gmra.mrb[16].mxu1 %vm593_vm0, %v4025_v5 }
  0xd6   : > { %3659 = vmatpush3.bf16.msra.mxu0 %v4835_v17  ;;  %3667 = vmatpush3.bf16.msra.mxu1 %v4837_v18 }
  0xd7   : > { %3626 = vmatprep.mubr.msk.bf16.mxu0 %vm593_vm0, %v4028_v8  ;;  %3646 = vmatprep.mubr.msk.bf16.mxu1 %vm593_vm0, %v4028_v8 }
  0xd8   : > { %3660 = vmatprep.subr.bf16.mxu0 %v5530_v13  ;;  %3668 = vmatprep.subr.bf16.mxu1 %v5530_v13 }
  0xda   : > { %3661 = vmatpush3.bf16.msra.mxu0 %v4842_v19  ;;  %3669 = vmatpush3.bf16.msra.mxu1 %v4846_v20 }
  0xdb   : > { %3674 = vmatprep.subr.bf16.mxu0 %v5530_v13  ;;  %3682 = vmatprep.subr.bf16.mxu1 %v5530_v13 }
  0xdd   : > { %3627 = vmatmul.mubr.msk.bf16.gmra.mrb[20].mxu0 %vm593_vm0, %v4029_v11  ;;  %3647 = vmatmul.mubr.msk.bf16.gmra.mrb[20].mxu1 %vm593_vm0, %v4029_v11 }
  0xde   : > { %3630 = vmatprep.mubr.msk.bf16.mxu0 %vm593_vm0, %v4030_v12  ;;  %3650 = vmatprep.mubr.msk.bf16.mxu1 %vm593_vm0, %v4030_v12 }
  0xe5   : > { %3631 = vmatmul.mubr.msk.bf16.gmra.mrb[24].mxu0 %vm593_vm0, %v4031_v14  ;;  %3651 = vmatmul.mubr.msk.bf16.gmra.mrb[24].mxu1 %vm593_vm0, %v4031_v14 }
  0xe6   : > { %3634 = vmatprep.mubr.msk.bf16.mxu0 %vm593_vm0, %v4034_v15  ;;  %3654 = vmatprep.mubr.msk.bf16.mxu1 %vm593_vm0, %v4034_v15 }
  0xed   : > { %3635 = vmatmul.mubr.msk.bf16.gmra.mrb[28].mxu0 %vm593_vm0, %v4035_v16  ;;  %3655 = vmatmul.mubr.msk.bf16.gmra.mrb[28].mxu1 %vm593_vm0, %v4035_v16 }
  0xee   : > { %3662 = vmatprep.mubr.msk.bf16.mxu0 %vm4520_vm1, %v5530_v13  ;;  %3670 = vmatprep.mubr.msk.bf16.mxu1 %vm4520_vm1, %v5530_v13 }
  0xf5   : > { %3663 = vmatmul.mubr.bf16.vlgmr.msra.gmra.mrb[32].mxu0 %v4521_v23  ;;  %3671 = vmatmul.mubr.bf16.vlgmr.msra.gmra.mrb[32].mxu1 %v4521_v23 }
  0xf6   : > { %3675 = vmatpush3.bf16.msra.mxu0 %v4869_v21  ;;  %3683 = vmatpush3.bf16.msra.mxu1 %v4871_v22 }
  0xf7   : > { %3676 = vmatprep.subr.bf16.mxu0 %v5530_v13  ;;  %3684 = vmatprep.subr.bf16.mxu1 %v5530_v13 }
  0xf8   : > { %3678 = vmatprep.mubr.msk.bf16.mxu0 %vm4520_vm1, %v5530_v13  ;;  %3686 = vmatprep.mubr.msk.bf16.mxu1 %vm4520_vm1, %v5530_v13 }
  0xfa   : > { %3677 = vmatpush3.bf16.msra.mxu0 %v4874_v24  ;;  %3685 = vmatpush3.bf16.msra.mxu1 %v4878_v25 }
  0xfb   : > { %3690 = vmatprep.subr.bf16.mxu0 %v5530_v13  ;;  %3698 = vmatprep.subr.bf16.mxu1 %v5530_v13 }
  0xfd   : > { %3679 = vmatmul.mubr.bf16.vlgmr.msra.gmra.mrb[36].mxu0 %v4521_v23  ;;  %3687 = vmatmul.mubr.bf16.vlgmr.msra.gmra.mrb[36].mxu1 %v4521_v23 }
  0xfe   : > { %3691 = vmatpush3.bf16.msra.mxu0 %v4835_v17  ;;  %3699 = vmatpush3.bf16.msra.mxu1 %v4837_v18 }
  0xff   : > { %3692 = vmatprep.subr.bf16.mxu0 %v5530_v13  ;;  %3700 = vmatprep.subr.bf16.mxu1 %v5530_v13 }
 0x100   : > { %3694 = vmatprep.mubr.msk.bf16.mxu0 %vm4520_vm1, %v5530_v13  ;;  %3702 = vmatprep.mubr.msk.bf16.mxu1 %vm4520_vm1, %v5530_v13 }
 0x102   : > { %3693 = vmatpush3.bf16.msra.mxu0 %v4842_v19  ;;  %3701 = vmatpush3.bf16.msra.mxu1 %v4846_v20 }
 0x103   : > { %3706 = vmatprep.subr.bf16.mxu0 %v5530_v13  ;;  %3714 = vmatprep.subr.bf16.mxu1 %v5530_v13 }
 0x188   : > { %v3584_v28 = vpop.f32.mrb[0].mxu0  ;;  %v3604_v30 = vpop.f32.mrb[0].mxu1 }
 0x189   : > { %v4912_v29 = vadd.f32 %v3584_v28, %v4904_v26  ;;  %v4914_v31 = vpop.f32.mrb[1].mxu0  ;;  %v4917_v32 = vadd.f32 %v3604_v30, %v4909_v27  ;;  %v4919_v33 = vpop.f32.mrb[1].mxu1 }
 0x18a   : > { %v3585_v34 = vpop.f32.mrb[2].mxu0  ;;  %v3605_v36 = vpop.f32.mrb[2].mxu1 }
 0x18b   : > { %v4922_v35 = vadd.f32 %v3585_v34, %v4904_v26  ;;  %v4924_v37 = vpop.f32.mrb[3].mxu0  ;;  %v4927_v38 = vadd.f32 %v3605_v36, %v4909_v27  ;;  %v4929_v39 = vpop.f32.mrb[3].mxu1 }
 0x190   : > { %v3588_v40 = vpop.f32.mrb[4].mxu0  ;;  %v3608_v42 = vpop.f32.mrb[4].mxu1 }
 0x191   : > { %v4932_v41 = vadd.f32 %v3588_v40, %v4904_v26  ;;  %v668_v43 = vpop.f32.mrb[5].mxu0  ;;  %v4935_v44 = vadd.f32 %v3608_v42, %v4909_v27  ;;  %v790_v46 = vpop.f32.mrb[5].mxu1 }
 0x192   : > { %v4938_v45 = vadd.f32 %v4904_v26, %v668_v43  ;;  %v3589_v47 = vpop.f32.mrb[6].mxu0  ;;  %v4941_v48 = vadd.f32 %v4909_v27, %v790_v46  ;;  %v3609_v50 = vpop.f32.mrb[6].mxu1  ;;  %v5006_v46 = vld [vmem:[%s5514_s6 + $0x2] ss:$0 sm:$0xff] }
 0x193   : > { %v4944_v49 = vadd.f32 %v3589_v47, %v4904_v26  ;;  %v671_v51 = vpop.f32.mrb[7].mxu0  ;;  %v4947_v52 = vadd.f32 %v3609_v50, %v4909_v27  ;;  %v793_v54 = vpop.f32.mrb[7].mxu1  ;;  %v5011_v47 = vld [vmem:[%s5514_s6 + $0x3] ss:$0 sm:$0xff] }
 0x194   : > { %v4950_v53 = vadd.f32 %v4904_v26, %v671_v51  ;;  %v4953_v55 = vadd.f32 %v4909_v27, %v793_v54 }
 0x198   : > { %v3592_v56 = vpop.f32.mrb[8].mxu0  ;;  %v3612_v58 = vpop.f32.mrb[8].mxu1 }
 0x199   : > { %v4956_v57 = vadd.f32 %v3592_v56, %v4904_v26  ;;  %v684_v59 = vpop.f32.mrb[9].mxu0  ;;  %v4959_v60 = vadd.f32 %v3612_v58, %v4909_v27  ;;  %v806_v62 = vpop.f32.mrb[9].mxu1 }
 0x19a   : > { %v4962_v61 = vadd.f32 %v4904_v26, %v684_v59  ;;  %v3593_v63 = vpop.f32.mrb[10].mxu0  ;;  %v4965_v0 = vadd.f32 %v4909_v27, %v806_v62  ;;  %v3613_v2 = vpop.f32.mrb[10].mxu1 }
 0x19b   : > { %5554 = vst [vmem:[#allocation25_spill] sm:$0xff] %v4956_v57  ;;  %5555 = vst [vmem:[#allocation26_spill] sm:$0xff] %v4959_v60  ;;  %v4968_v1 = vadd.f32 %v3593_v63, %v4904_v26  ;;  %v687_v3 = vpop.f32.mrb[11].mxu0  ;;  %v4971_v4 = vadd.f32 %v3613_v2, %v4909_v27  ;;  %v809_v6 = vpop.f32.mrb[11].mxu1 }
 0x19c   : > { %v4974_v5 = vadd.f32 %v4904_v26, %v687_v3  ;;  %v4977_v7 = vadd.f32 %v4909_v27, %v809_v6 }
 0x19d   : > { %5556 = vst [vmem:[#allocation27_spill] sm:$0xff] %v4968_v1  ;;  %5557 = vst [vmem:[#allocation28_spill] sm:$0xff] %v4971_v4 }
 0x19e   : > { %5558 = vst [vmem:[#allocation29_spill] sm:$0xff] %v4977_v7 }
 0x1a0   : > { %v3596_v8 = vpop.f32.mrb[12].mxu0  ;;  %v3616_v10 = vpop.f32.mrb[12].mxu1 }
 0x1a1   : > { %v4980_v9 = vadd.f32 %v3596_v8, %v4904_v26  ;;  %v700_v11 = vpop.f32.mrb[13].mxu0  ;;  %v4983_v12 = vadd.f32 %v3616_v10, %v4909_v27  ;;  %v822_v15 = vpop.f32.mrb[13].mxu1 }
 0x1a2   : > { %v4986_v14 = vadd.f32 %v4904_v26, %v700_v11  ;;  %v3597_v16 = vpop.f32.mrb[14].mxu0  ;;  %v4989_v23 = vadd.f32 %v4909_v27, %v822_v15  ;;  %v3617_v30 = vpop.f32.mrb[14].mxu1 }
 0x1a3   : > { %5559 = vst [vmem:[#allocation30_spill] sm:$0xff] %v4980_v9  ;;  %5560 = vst [vmem:[#allocation31_spill] sm:$0xff] %v4983_v12  ;;  %v4992_v28 = vadd.f32 %v3597_v16, %v4904_v26  ;;  %v703_v34 = vpop.f32.mrb[15].mxu0  ;;  %v4995_v36 = vadd.f32 %v3617_v30, %v4909_v27  ;;  %v825_v42 = vpop.f32.mrb[15].mxu1 }
 0x1a4   : > { %5561 = vst [vmem:[#allocation32_spill] sm:$0xff] %v4986_v14  ;;  %5562 = vst [vmem:[#allocation33_spill] sm:$0xff] %v4989_v23  ;;  %v4998_v40 = vadd.f32 %v4904_v26, %v703_v34  ;;  %v5001_v43 = vadd.f32 %v4909_v27, %v825_v42 }
 0x1a5   : > { %5563 = vst [vmem:[#allocation34_spill] sm:$0xff] %v4992_v28  ;;  %5564 = vst [vmem:[#allocation35_spill] sm:$0xff] %v4995_v36 }
 0x1a6   : > { %5565 = vst [vmem:[#allocation36_spill] sm:$0xff] %v4998_v40  ;;  %5566 = vst [vmem:[#allocation37_spill] sm:$0xff] %v5001_v43 }
 0x1a8   : > { %v3624_v50 = vpop.f32.mrb[16].mxu0  ;;  %v3644_v54 = vpop.f32.mrb[16].mxu1 }
 0x1a9   : > { %v5014_v51 = vadd.f32 %v3624_v50, %v5006_v46  ;;  %v5016_v56 = vpop.f32.mrb[17].mxu0  ;;  %v5019_v58 = vadd.f32 %v3644_v54, %v5011_v47  ;;  %v5021_v59 = vpop.f32.mrb[17].mxu1 }
 0x1aa   : > { %v3625_v62 = vpop.f32.mrb[18].mxu0  ;;  %v3645_v2 = vpop.f32.mrb[18].mxu1 }
 0x1ab   : > { %v5024_v63 = vadd.f32 %v3625_v62, %v5006_v46  ;;  %v5026_v3 = vpop.f32.mrb[19].mxu0  ;;  %v5029_v6 = vadd.f32 %v3645_v2, %v5011_v47  ;;  %v5031_v8 = vpop.f32.mrb[19].mxu1 }
 0x1b0   : > { %v3628_v10 = vpop.f32.mrb[20].mxu0  ;;  %v3648_v15 = vpop.f32.mrb[20].mxu1 }
 0x1b1   : > { %v5034_v11 = vadd.f32 %v3628_v10, %v5006_v46  ;;  %v912_v16 = vpop.f32.mrb[21].mxu0  ;;  %v5037_v30 = vadd.f32 %v3648_v15, %v5011_v47  ;;  %v1034_v42 = vpop.f32.mrb[21].mxu1 }
 0x1b2   : > { %v5040_v34 = vadd.f32 %v5006_v46, %v912_v16  ;;  %v3629_v50 = vpop.f32.mrb[22].mxu0  ;;  %v5043_v54 = vadd.f32 %v5011_v47, %v1034_v42  ;;  %v3649_v2 = vpop.f32.mrb[22].mxu1 }
 0x1b3   : > { %v5046_v62 = vadd.f32 %v3629_v50, %v5006_v46  ;;  %v915_v13 = vpop.f32.mrb[23].mxu0  ;;  %v5049_v10 = vadd.f32 %v3649_v2, %v5011_v47  ;;  %v1037_v15 = vpop.f32.mrb[23].mxu1 }
 0x1b4   : > { %v5052_v36 = vadd.f32 %v5006_v46, %v915_v13  ;;  %v5055_v16 = vadd.f32 %v5011_v47, %v1037_v15 }
 0x1b8   : > { %v3632_v28 = vpop.f32.mrb[24].mxu0  ;;  %v3652_v42 = vpop.f32.mrb[24].mxu1 }
 0x1b9   : > { %v5058_v12 = vadd.f32 %v3632_v28, %v5006_v46  ;;  %v928_v9 = vpop.f32.mrb[25].mxu0  ;;  %v5061_v50 = vadd.f32 %v3652_v42, %v5011_v47  ;;  %v1050_v2 = vpop.f32.mrb[25].mxu1 }
 0x1ba   : > { %v5064_v43 = vadd.f32 %v5006_v46, %v928_v9  ;;  %v3633_v40 = vpop.f32.mrb[26].mxu0  ;;  %v5067_v13 = vadd.f32 %v5011_v47, %v1050_v2  ;;  %v3653_v23 = vpop.f32.mrb[26].mxu1 }
 0x1bb   : > { %5567 = vst [vmem:[#allocation38_spill] sm:$0xff] %v5058_v12  ;;  %5568 = vst [vmem:[#allocation39_spill] sm:$0xff] %v5061_v50  ;;  %v5070_v15 = vadd.f32 %v3633_v40, %v5006_v46  ;;  %v931_v14 = vpop.f32.mrb[27].mxu0  ;;  %v5073_v28 = vadd.f32 %v3653_v23, %v5011_v47  ;;  %v1053_v42 = vpop.f32.mrb[27].mxu1 }
 0x1bc   : > { %5569 = vst [vmem:[#allocation40_spill] sm:$0xff] %v5064_v43  ;;  %5570 = vst [vmem:[#allocation41_spill] sm:$0xff] %v5067_v13  ;;  %v5076_v12 = vadd.f32 %v5006_v46, %v931_v14  ;;  %v5079_v9 = vadd.f32 %v5011_v47, %v1053_v42 }
 0x1bd   : > { %5571 = vst [vmem:[#allocation42_spill] sm:$0xff] %v5070_v15  ;;  %5572 = vst [vmem:[#allocation43_spill] sm:$0xff] %v5073_v28 }
 0x1be   : > { %5573 = vst [vmem:[#allocation44_spill] sm:$0xff] %v5076_v12  ;;  %5574 = vst [vmem:[#allocation45_spill] sm:$0xff] %v5079_v9 }
 0x1c0   : > { %v3636_v50 = vpop.f32.mrb[28].mxu0  ;;  %v3656_v2 = vpop.f32.mrb[28].mxu1 }
 0x1c1   : > { %v5082_v4 = vadd.f32 %v3636_v50, %v5006_v46  ;;  %v944_v1 = vpop.f32.mrb[29].mxu0  ;;  %v5085_v40 = vadd.f32 %v3656_v2, %v5011_v47  ;;  %v1066_v23 = vpop.f32.mrb[29].mxu1 }
 0x1c2   : > { %v5088_v15 = vadd.f32 %v5006_v46, %v944_v1  ;;  %v3637_v28 = vpop.f32.mrb[30].mxu0  ;;  %v5091_v14 = vadd.f32 %v5011_v47, %v1066_v23  ;;  %v3657_v60 = vpop.f32.mrb[30].mxu1  ;;  %v775_v23 = vadd.f32 %v4909_v27, %v4919_v33 }
 0x1c3   : > { %5575 = vst [vmem:[#allocation46_spill] sm:$0xff] %v5082_v4  ;;  %5576 = vst [vmem:[#allocation47_spill] sm:$0xff] %v5085_v40  ;;  %v5094_v42 = vadd.f32 %v3637_v28, %v5006_v46  ;;  %v947_v57 = vpop.f32.mrb[31].mxu0  ;;  %v5097_v50 = vadd.f32 %v3657_v60, %v5011_v47  ;;  %v1069_v2 = vpop.f32.mrb[31].mxu1  ;;  %v653_v40 = vadd.f32 %v4904_v26, %v4914_v31 }
 0x1c4   : > { %5577 = vst [vmem:[#allocation48_spill] sm:$0xff] %v5088_v15  ;;  %5578 = vst [vmem:[#allocation49_spill] sm:$0xff] %v5091_v14  ;;  %v5100_v4 = vadd.f32 %v5006_v46, %v947_v57  ;;  %v5103_v1 = vadd.f32 %v5011_v47, %v1069_v2  ;;  %v778_v57 = vadd.f32 %v4909_v27, %v4929_v39 }
 0x1c5   : > { %5579 = vst [vmem:[#allocation50_spill] sm:$0xff] %v5094_v42  ;;  %5580 = vst [vmem:[#allocation51_spill] sm:$0xff] %v5097_v50  ;;  %v656_v42 = vadd.f32 %v4904_v26, %v4924_v37  ;;  %v897_v37 = vadd.f32 %v5006_v46, %v5016_v56  ;;  %v1019_v27 = vadd.f32 %v5011_v47, %v5021_v59 }
 0x1c6   : > { %5581 = vst [vmem:[#allocation52_spill] sm:$0xff] %v5100_v4  ;;  %5582 = vst [vmem:[#allocation53_spill] sm:$0xff] %v5103_v1 }
 0x1c8   : > { %v1149_v28 = vpop.f32.mrb[32].mxu0  ;;  %v1216_v60 = vpop.f32.mrb[32].mxu1 }
 0x1c9   : > { %v1156_v14 = vadd.f32 %v1149_v28, %v653_v40  ;;  %v3664_v50 = vpop.f32.mrb[33].mxu0  ;;  %v1223_v4 = vadd.f32 %v1216_v60, %v775_v23  ;;  %v3672_v15 = vpop.f32.mrb[33].mxu1 }
 0x1ca   : > { %v1152_v2 = vpop.f32.mrb[34].mxu0  ;;  %v1219_v12 = vpop.f32.mrb[34].mxu1  ;;  %v900_v15 = vadd.f32 %v5006_v46, %v5026_v3 }
 0x1cb   : > { %v3345_v1 = vmul.f32 -1.442695, %v1156_v14  ;;  %v1157_v9 = vadd.f32 %v1152_v2, %v656_v42  ;;  %v3665_v31 = vpop.f32.mrb[35].mxu0  ;;  %v3349_v13 = vmul.f32 -1.442695, %v1223_v4  ;;  %v1224_v43 = vadd.f32 %v1219_v12, %v778_v57  ;;  %v3673_v33 = vpop.f32.mrb[35].mxu1 }
 0x1cd   : > { %4047 = vpow2.f32 %v3345_v1  ;;  %v3346_v7 = vmul.f32 -1.442695, %v1157_v9  ;;  %v3350_v26 = vmul.f32 -1.442695, %v1224_v43  ;;  %v1022_v9 = vadd.f32 %v5011_v47, %v5031_v8 }
 0x1ce   : > { %4049 = vpow2.f32 %v3349_v13 }
 0x1cf   : > { %4051 = vpow2.f32 %v3346_v7 }
 0x1d0   : > { %4053 = vpow2.f32 %v3350_v26  ;;  %v1283_v39 = vpop.f32.mrb[36].mxu0  ;;  %v1340_v4 = vpop.f32.mrb[36].mxu1 }
 0x1d1   : > { %v1290_v40 = vadd.f32 %v1283_v39, %v897_v37  ;;  %v3680_v12 = vpop.f32.mrb[37].mxu0  ;;  %v1347_v13 = vadd.f32 %v1340_v4, %v1019_v27  ;;  %v3688_v43 = vpop.f32.mrb[37].mxu1 }
 0x1d2   : > { %v1286_v14 = vpop.f32.mrb[38].mxu0  ;;  %v1343_v56 = vpop.f32.mrb[38].mxu1 }
 0x1d3   : > { %v1291_v42 = vadd.f32 %v1286_v14, %v900_v15  ;;  %v3681_v7 = vpop.f32.mrb[39].mxu0  ;;  %v3355_v50 = vmul.f32 -1.442695, %v1347_v13  ;;  %v1348_v1 = vadd.f32 %v1343_v56, %v1022_v9  ;;  %v3689_v59 = vpop.f32.mrb[39].mxu1  ;;  %4055 = vtanh.f32 %v1290_v40 }
 0x1d5   : > { %v3356_v23 = vmul.f32 -1.442695, %v1348_v1  ;;  %4057 = vtanh.f32 %v1291_v42 }
 0x1d6   : > { %4059 = vpow2.f32 %v3355_v50 }
 0x1d7   : > { %v4048_v28 = vpop.eup %4047  ;;  %4061 = vpow2.f32 %v3356_v23 }
 0x1d8   : > { %v4050_v46 = vpop.eup %4049  ;;  %v1164_v3 = vadd.f32 1.0, %v4048_v28 }
 0x1d9   : > { %v4052_v60 = vpop.eup %4051  ;;  %v1231_v57 = vadd.f32 1.0, %v4050_v46 }
 0x1da   : > { %v4054_v47 = vpop.eup %4053  ;;  %4063 = vrcp.f32 %v1164_v3  ;;  %v1165_v8 = vadd.f32 1.0, %v4052_v60  ;;  %v5583_v3 = vmov 0.0  }
 0x1db   : > { %4065 = vrcp.f32 %v1231_v57  ;;  %v1232_v2 = vadd.f32 1.0, %v4054_v47 }
 0x1dc   : > { %4067 = vrcp.f32 %v1165_v8 }
 0x1dd   : > { %4069 = vrcp.f32 %v1232_v2  ;;  %v4056_v31 = vpop.eup %4055 }
 0x1df   : > { %v4058_v33 = vpop.eup %4057 }
 0x1e0   : > { %v4060_v26 = vpop.eup %4059 }
 0x1e1   : > { %v4062_v37 = vpop.eup %4061  ;;  %v1355_v40 = vadd.f32 1.0, %v4060_v26 }
 0x1e2   : > { %v1356_v43 = vadd.f32 1.0, %v4062_v37 }
 0x1e3   : > { %4071 = vrcp.f32 %v1355_v40 }
 0x1e4   : > { %v4064_v27 = vpop.eup %4063 }
 0x1e5   : > { %v4066_v39 = vpop.eup %4065  ;;  %v1363_v15 = vmul.f32 %v4064_v27, %v4056_v31 }
 0x1e6   : > { %v4068_v4 = vpop.eup %4067  ;;  %v1361_v12 = vmul.f32 0.0, %v4066_v39 }
 0x1e7   : > { %v4070_v9 = vpop.eup %4069  ;;  %v1364_v13 = vmul.f32 %v4068_v4, %v4058_v33 }
 0x1e8   : > { %v1362_v14 = vmul.f32 0.0, %v4070_v9  ;;  %v5121_v42 = vadd.f32 %v1363_v15, %v1361_v12 }
 0x1ea   : > { %4073 = vtanh.f32 %v5121_v42  ;;  %v5124_v56 = vadd.f32 %v1364_v13, %v1362_v14 }
 0x1eb   : > { %4075 = vrcp.f32 %v1356_v43 }
 0x1ec   : > { %4077 = vtanh.f32 %v5124_v56 }
 0x1ed   : > { %v4072_v7 = vpop.eup %4071 }
 0x1f4   : > { %v4074_v50 = vpop.eup %4073 }
 0x1f5   : > { %v4076_v1 = vpop.eup %4075  ;;  %v1369_v23 = vmul.f32 %v4074_v50, %v4072_v7 }
 0x1f6   : > { %v4078_v59 = vpop.eup %4077 }
 0x1f7   : > { %v1370_v28 = vmul.f32 %v4078_v59, %v4076_v1 }
 0x1f9   : > { %v1371_v46 = vpack.c.bf16 %v1370_v28, %v1369_v23 }
 0x1fb   : > { %3695 = vmatmul.mubr.msk.bf16.vlgmr.msra.gmra.mrb[40].mxu0 %vm593_vm0, %v1371_v46  ;;  %3703 = vmatmul.mubr.msk.bf16.vlgmr.msra.gmra.mrb[40].mxu1 %vm593_vm0, %v1371_v46 }
 0x1fc   : > { %3707 = vmatpush3.bf16.msra.mxu0 %v4869_v21  ;;  %3715 = vmatpush3.bf16.msra.mxu1 %v4871_v22 }
 0x1fd   : > { %3708 = vmatprep.subr.bf16.mxu0 %v5583_v3  ;;  %3716 = vmatprep.subr.bf16.mxu1 %v5583_v3 }
 0x1fe   : > { %3710 = vmatprep.mubr.msk.bf16.mxu0 %vm4520_vm1, %v5583_v3  ;;  %3718 = vmatprep.mubr.msk.bf16.mxu1 %vm4520_vm1, %v5583_v3 }
 0x200   : > { %3709 = vmatpush3.bf16.msra.mxu0 %v4874_v24  ;;  %3717 = vmatpush3.bf16.msra.mxu1 %v4878_v25 }
 0x201   : > { %3722 = vmatprep.subr.bf16.mxu0 %v5583_v3  ;;  %3730 = vmatprep.subr.bf16.mxu1 %v5583_v3 }
 0x203   : > { %3711 = vmatmul.mubr.msk.bf16.vlgmr.msra.gmra.mrb[44].mxu0 %vm593_vm0, %v1371_v46  ;;  %3719 = vmatmul.mubr.msk.bf16.vlgmr.msra.gmra.mrb[44].mxu1 %vm593_vm0, %v1371_v46 }
 0x204   : > { %3723 = vmatpush3.bf16.msra.mxu0 %v4835_v17  ;;  %3731 = vmatpush3.bf16.msra.mxu1 %v4837_v18 }
 0x205   : > { %3724 = vmatprep.subr.bf16.mxu0 %v5583_v3  ;;  %3732 = vmatprep.subr.bf16.mxu1 %v5583_v3 }
 0x206   : > { %3726 = vmatprep.mubr.msk.bf16.mxu0 %vm4520_vm1, %v5583_v3  ;;  %3734 = vmatprep.mubr.msk.bf16.mxu1 %vm4520_vm1, %v5583_v3 }
 0x208   : > { %3725 = vmatpush3.bf16.msra.mxu0 %v4842_v19  ;;  %3733 = vmatpush3.bf16.msra.mxu1 %v4846_v20 }
 0x209   : > { %3738 = vmatprep.subr.bf16.mxu0 %v5583_v3  ;;  %3746 = vmatprep.subr.bf16.mxu1 %v5583_v3 }
 0x2ce   : > { %v1409_v60 = vpop.f32.mrb[40].mxu0  ;;  %v1464_v57 = vpop.f32.mrb[40].mxu1 }
 0x2cf   : > { %v1416_v47 = vadd.f32 %v1409_v60, %v4912_v29  ;;  %v1471_v8 = vadd.f32 %v1464_v57, %v4917_v32  ;;  %v3696_v2 = vpop.f32.mrb[41].mxu0  ;;  %v3704_v31 = vpop.f32.mrb[41].mxu1 }
 0x2d0   : > { %v1412_v33 = vpop.f32.mrb[42].mxu0  ;;  %v1467_v26 = vpop.f32.mrb[42].mxu1 }
 0x2d1   : > { %v3358_v37 = vmul.f32 -1.442695, %v1416_v47  ;;  %v3361_v27 = vmul.f32 -1.442695, %v1471_v8  ;;  %v1417_v39 = vadd.f32 %v1412_v33, %v4922_v35  ;;  %v1472_v15 = vadd.f32 %v1467_v26, %v4927_v38  ;;  %v3697_v40 = vpop.f32.mrb[43].mxu0  ;;  %v3705_v4 = vpop.f32.mrb[43].mxu1 }
 0x2d3   : > { %4079 = vpow2.f32 %v3358_v37  ;;  %v3359_v12 = vmul.f32 -1.442695, %v1417_v39  ;;  %v3362_v9 = vmul.f32 -1.442695, %v1472_v15 }
 0x2d4   : > { %4081 = vpow2.f32 %v3361_v27 }
 0x2d5   : > { %4083 = vpow2.f32 %v3359_v12 }
 0x2d6   : > { %4085 = vpow2.f32 %v3362_v9  ;;  %v1519_v29 = vpop.f32.mrb[44].mxu0  ;;  %v1564_v32 = vpop.f32.mrb[44].mxu1 }
 0x2d7   : > { %v1526_v13 = vadd.f32 %v1519_v29, %v5014_v51  ;;  %v1571_v43 = vadd.f32 %v1564_v32, %v5019_v58  ;;  %v3712_v14 = vpop.f32.mrb[45].mxu0  ;;  %v3720_v7 = vpop.f32.mrb[45].mxu1 }
 0x2d8   : > { %v1522_v50 = vpop.f32.mrb[46].mxu0  ;;  %v1567_v35 = vpop.f32.mrb[46].mxu1 }
 0x2d9   : > { %v3365_v1 = vmul.f32 -1.442695, %v1571_v43  ;;  %v1527_v38 = vadd.f32 %v1522_v50, %v5024_v63  ;;  %v1572_v59 = vadd.f32 %v1567_v35, %v5029_v6  ;;  %v3713_v23 = vpop.f32.mrb[47].mxu0  ;;  %v3721_v28 = vpop.f32.mrb[47].mxu1  ;;  %4087 = vtanh.f32 %v1526_v13 }
 0x2db   : > { %v3366_v46 = vmul.f32 -1.442695, %v1572_v59  ;;  %4089 = vpow2.f32 %v3365_v1 }
 0x2dc   : > { %4091 = vtanh.f32 %v1527_v38 }
 0x2dd   : > { %v4080_v60 = vpop.eup %4079  ;;  %4093 = vpow2.f32 %v3366_v46 }
 0x2de   : > { %v4082_v57 = vpop.eup %4081  ;;  %v1424_v47 = vadd.f32 1.0, %v4080_v60 }
 0x2df   : > { %v4084_v51 = vpop.eup %4083  ;;  %v1479_v58 = vadd.f32 1.0, %v4082_v57 }
 0x2e0   : > { %v4086_v8 = vpop.eup %4085  ;;  %4095 = vrcp.f32 %v1424_v47  ;;  %v1425_v2 = vadd.f32 1.0, %v4084_v51 }
 0x2e1   : > { %4097 = vrcp.f32 %v1479_v58  ;;  %v1480_v31 = vadd.f32 1.0, %v4086_v8 }
 0x2e2   : > { %4099 = vrcp.f32 %v1425_v2 }
 0x2e3   : > { %4101 = vrcp.f32 %v1480_v31  ;;  %v4088_v63 = vpop.eup %4087 }
 0x2e5   : > { %v4090_v6 = vpop.eup %4089 }
 0x2e6   : > { %v4092_v33 = vpop.eup %4091  ;;  %v1579_v15 = vadd.f32 1.0, %v4090_v6 }
 0x2e7   : > { %v4094_v26 = vpop.eup %4093 }
 0x2e8   : > { %v1580_v29 = vadd.f32 1.0, %v4094_v26  ;;  %4103 = vrcp.f32 %v1579_v15 }
 0x2ea   : > { %v4096_v37 = vpop.eup %4095 }
 0x2eb   : > { %v4098_v27 = vpop.eup %4097  ;;  %v1587_v39 = vmul.f32 %v4096_v37, %v4088_v63 }
 0x2ec   : > { %v4100_v40 = vpop.eup %4099  ;;  %v1585_v4 = vmul.f32 %v4098_v27, %v5121_v42 }
 0x2ed   : > { %v4102_v12 = vpop.eup %4101  ;;  %v1588_v9 = vmul.f32 %v4100_v40, %v4092_v33 }
 0x2ee   : > { %v1586_v32 = vmul.f32 %v4102_v12, %v5124_v56  ;;  %v5165_v13 = vadd.f32 %v1587_v39, %v1585_v4 }
 0x2f0   : > { %4105 = vtanh.f32 %v5165_v13  ;;  %v5168_v43 = vadd.f32 %v1588_v9, %v1586_v32 }
 0x2f1   : > { %4107 = vrcp.f32 %v1580_v29 }
 0x2f2   : > { %4109 = vtanh.f32 %v5168_v43  ;;  %v4104_v14 = vpop.eup %4103 }
 0x2fa   : > { %v4106_v7 = vpop.eup %4105 }
 0x2fb   : > { %v4108_v50 = vpop.eup %4107  ;;  %v1593_v42 = vmul.f32 %v4106_v7, %v4104_v14 }
 0x2fc   : > { %v4110_v35 = vpop.eup %4109 }
 0x2fd   : > { %v1594_v1 = vmul.f32 %v4110_v35, %v4108_v50 }
 0x2ff   : > { %v1595_v38 = vpack.c.bf16 %v1594_v1, %v1593_v42 }
 0x301   : > { %3727 = vmatmul.mubr.msk.bf16.vlgmr.msra.gmra.mrb[48].mxu0 %vm593_vm0, %v1595_v38  ;;  %3735 = vmatmul.mubr.msk.bf16.vlgmr.msra.gmra.mrb[48].mxu1 %vm593_vm0, %v1595_v38 }
 0x302   : > { %3739 = vmatpush3.bf16.msra.mxu0 %v4869_v21  ;;  %3747 = vmatpush3.bf16.msra.mxu1 %v4871_v22 }
 0x303   : > { %3740 = vmatprep.subr.bf16.mxu0 %v5583_v3  ;;  %3748 = vmatprep.subr.bf16.mxu1 %v5583_v3 }
 0x304   : > { %3742 = vmatprep.mubr.msk.bf16.mxu0 %vm4520_vm1, %v5583_v3  ;;  %3750 = vmatprep.mubr.msk.bf16.mxu1 %vm4520_vm1, %v5583_v3 }
 0x306   : > { %3741 = vmatpush3.bf16.msra.mxu0 %v4874_v24  ;;  %3749 = vmatpush3.bf16.msra.mxu1 %v4878_v25 }
 0x307   : > { %3754 = vmatprep.subr.bf16.mxu0 %v5583_v3  ;;  %3762 = vmatprep.subr.bf16.mxu1 %v5583_v3 }
 0x309   : > { %3743 = vmatmul.mubr.msk.bf16.vlgmr.msra.gmra.mrb[52].mxu0 %vm593_vm0, %v1595_v38  ;;  %3751 = vmatmul.mubr.msk.bf16.vlgmr.msra.gmra.mrb[52].mxu1 %vm593_vm0, %v1595_v38 }
 0x30a   : > { %3755 = vmatpush3.bf16.msra.mxu0 %v4835_v17  ;;  %3763 = vmatpush3.bf16.msra.mxu1 %v4837_v18 }
 0x30b   : > { %3756 = vmatprep.subr.bf16.mxu0 %v5583_v3  ;;  %3764 = vmatprep.subr.bf16.mxu1 %v5583_v3 }
 0x30c   : > { %3758 = vmatprep.mubr.msk.bf16.mxu0 %vm4520_vm1, %v5583_v3  ;;  %3766 = vmatprep.mubr.msk.bf16.mxu1 %vm4520_vm1, %v5583_v3 }
 0x30e   : > { %3757 = vmatpush3.bf16.msra.mxu0 %v4842_v19  ;;  %3765 = vmatpush3.bf16.msra.mxu1 %v4846_v20 }
 0x30f   : > { %3770 = vmatprep.subr.bf16.mxu0 %v5583_v3  ;;  %3778 = vmatprep.subr.bf16.mxu1 %v5583_v3 }
 0x3d4   : > { %v1633_v56 = vpop.f32.mrb[48].mxu0  ;;  %v1688_v59 = vpop.f32.mrb[48].mxu1 }
 0x3d5   : > { %v1640_v23 = vadd.f32 %v1633_v56, %v4938_v45  ;;  %v1695_v28 = vadd.f32 %v1688_v59, %v4941_v48  ;;  %v3728_v46 = vpop.f32.mrb[49].mxu0  ;;  %v3736_v60 = vpop.f32.mrb[49].mxu1 }
 0x3d6   : > { %v1636_v57 = vpop.f32.mrb[50].mxu0  ;;  %v1691_v47 = vpop.f32.mrb[50].mxu1 }
 0x3d7   : > { %v3368_v51 = vmul.f32 -1.442695, %v1640_v23  ;;  %v3371_v58 = vmul.f32 -1.442695, %v1695_v28  ;;  %v1641_v8 = vadd.f32 %v1636_v57, %v4950_v53  ;;  %v1696_v2 = vadd.f32 %v1691_v47, %v4953_v55  ;;  %v3729_v31 = vpop.f32.mrb[51].mxu0  ;;  %v3737_v63 = vpop.f32.mrb[51].mxu1 }
 0x3d9   : > { %4111 = vpow2.f32 %v3368_v51  ;;  %v3369_v6 = vmul.f32 -1.442695, %v1641_v8  ;;  %v3372_v33 = vmul.f32 -1.442695, %v1696_v2 }
 0x3da   : > { %4113 = vpow2.f32 %v3371_v58 }
 0x3db   : > { %4115 = vpow2.f32 %v3369_v6 }
 0x3dc   : > { %4117 = vpow2.f32 %v3372_v33  ;;  %v1743_v45 = vpop.f32.mrb[52].mxu0  ;;  %v1788_v48 = vpop.f32.mrb[52].mxu1 }
 0x3dd   : > { %v1750_v26 = vadd.f32 %v1743_v45, %v5040_v34  ;;  %v1795_v37 = vadd.f32 %v1788_v48, %v5043_v54  ;;  %v3744_v27 = vpop.f32.mrb[53].mxu0  ;;  %v3752_v39 = vpop.f32.mrb[53].mxu1 }
 0x3de   : > { %v1746_v15 = vpop.f32.mrb[54].mxu0  ;;  %v1791_v53 = vpop.f32.mrb[54].mxu1 }
 0x3df   : > { %v3375_v40 = vmul.f32 -1.442695, %v1795_v37  ;;  %v1751_v55 = vadd.f32 %v1746_v15, %v5052_v36  ;;  %v1796_v4 = vadd.f32 %v1791_v53, %v5055_v16  ;;  %v3745_v12 = vpop.f32.mrb[55].mxu0  ;;  %v3753_v9 = vpop.f32.mrb[55].mxu1  ;;  %4119 = vtanh.f32 %v1750_v26 }
 0x3e1   : > { %v3376_v29 = vmul.f32 -1.442695, %v1796_v4  ;;  %4121 = vpow2.f32 %v3375_v40 }
 0x3e2   : > { %4123 = vtanh.f32 %v1751_v55 }
 0x3e3   : > { %v4112_v32 = vpop.eup %4111  ;;  %4125 = vpow2.f32 %v3376_v29 }
 0x3e4   : > { %v4114_v14 = vpop.eup %4113  ;;  %v1648_v7 = vadd.f32 1.0, %v4112_v32 }
 0x3e5   : > { %v4116_v34 = vpop.eup %4115  ;;  %v1703_v54 = vadd.f32 1.0, %v4114_v14 }
 0x3e6   : > { %v4118_v50 = vpop.eup %4117  ;;  %4127 = vrcp.f32 %v1648_v7  ;;  %v1649_v35 = vadd.f32 1.0, %v4116_v34 }
 0x3e7   : > { %4129 = vrcp.f32 %v1703_v54  ;;  %v1704_v42 = vadd.f32 1.0, %v4118_v50 }
 0x3e8   : > { %4131 = vrcp.f32 %v1649_v35 }
 0x3e9   : > { %4133 = vrcp.f32 %v1704_v42  ;;  %v4120_v36 = vpop.eup %4119 }
 0x3eb   : > { %v4122_v16 = vpop.eup %4121 }
 0x3ec   : > { %v4124_v1 = vpop.eup %4123  ;;  %v1803_v28 = vadd.f32 1.0, %v4122_v16 }
 0x3ed   : > { %v4126_v38 = vpop.eup %4125 }
 0x3ee   : > { %v1804_v51 = vadd.f32 1.0, %v4126_v38  ;;  %4135 = vrcp.f32 %v1803_v28 }
 0x3f0   : > { %v4128_v56 = vpop.eup %4127 }
 0x3f1   : > { %v4130_v59 = vpop.eup %4129  ;;  %v1811_v23 = vmul.f32 %v4128_v56, %v4120_v36 }
 0x3f2   : > { %v4132_v46 = vpop.eup %4131  ;;  %v1809_v60 = vmul.f32 %v4130_v59, %v5165_v13 }
 0x3f3   : > { %v4134_v57 = vpop.eup %4133  ;;  %v1812_v47 = vmul.f32 %v4132_v46, %v4124_v1 }
 0x3f4   : > { %v1810_v58 = vmul.f32 %v4134_v57, %v5168_v43  ;;  %v5209_v8 = vadd.f32 %v1811_v23, %v1809_v60 }
 0x3f6   : > { %4137 = vtanh.f32 %v5209_v8  ;;  %v5212_v2 = vadd.f32 %v1812_v47, %v1810_v58 }
 0x3f7   : > { %4139 = vrcp.f32 %v1804_v51 }
 0x3f8   : > { %4141 = vtanh.f32 %v5212_v2  ;;  %v4136_v31 = vpop.eup %4135 }
 0x400   : > { %v4138_v63 = vpop.eup %4137 }
 0x401   : > { %v4140_v6 = vpop.eup %4139  ;;  %v1817_v13 = vmul.f32 %v4138_v63, %v4136_v31 }
 0x402   : > { %v4142_v33 = vpop.eup %4141 }
 0x403   : > { %v1818_v45 = vmul.f32 %v4142_v33, %v4140_v6 }
 0x405   : > { %v1819_v48 = vpack.c.bf16 %v1818_v45, %v1817_v13 }
 0x407   : > { %3759 = vmatmul.mubr.msk.bf16.vlgmr.msra.gmra.mrb[56].mxu0 %vm593_vm0, %v1819_v48  ;;  %3767 = vmatmul.mubr.msk.bf16.vlgmr.msra.gmra.mrb[56].mxu1 %vm593_vm0, %v1819_v48 }
 0x408   : > { %3771 = vmatpush3.bf16.msra.mxu0 %v4869_v21  ;;  %3779 = vmatpush3.bf16.msra.mxu1 %v4871_v22 }
 0x409   : > { %3772 = vmatprep.subr.bf16.mxu0 %v5583_v3  ;;  %3780 = vmatprep.subr.bf16.mxu1 %v5583_v3 }
 0x40a   : > { %3774 = vmatprep.mubr.msk.bf16.mxu0 %vm4520_vm1, %v5583_v3  ;;  %3782 = vmatprep.mubr.msk.bf16.mxu1 %vm4520_vm1, %v5583_v3 }
 0x40c   : > { %3773 = vmatpush3.bf16.msra.mxu0 %v4874_v24  ;;  %3781 = vmatpush3.bf16.msra.mxu1 %v4878_v25 }
 0x40d   : > { %3786 = vmatprep.subr.bf16.mxu0 %v5583_v3  ;;  %3794 = vmatprep.subr.bf16.mxu1 %v5583_v3 }
 0x40f   : > { %3775 = vmatmul.mubr.msk.bf16.vlgmr.msra.gmra.mrb[60].mxu0 %vm593_vm0, %v1819_v48  ;;  %3783 = vmatmul.mubr.msk.bf16.vlgmr.msra.gmra.mrb[60].mxu1 %vm593_vm0, %v1819_v48 }
 0x410   : > { %3787 = vmatpush3.bf16.msra.mxu0 %v4835_v17  ;;  %3795 = vmatpush3.bf16.msra.mxu1 %v4837_v18 }
 0x411   : > { %3788 = vmatprep.subr.bf16.mxu0 %v5583_v3  ;;  %3796 = vmatprep.subr.bf16.mxu1 %v5583_v3 }
 0x412   : > { %3790 = vmatprep.mubr.msk.bf16.mxu0 %vm4520_vm1, %v5583_v3  ;;  %3798 = vmatprep.mubr.msk.bf16.mxu1 %vm4520_vm1, %v5583_v3 }
 0x414   : > { %3789 = vmatpush3.bf16.msra.mxu0 %v4842_v19  ;;  %3797 = vmatpush3.bf16.msra.mxu1 %v4846_v20 }
 0x415   : > { %3802 = vmatprep.subr.bf16.mxu0 %v5583_v3  ;;  %3810 = vmatprep.subr.bf16.mxu1 %v5583_v3 }
 0x4da   : > { %v1857_v17 = vpop.f32.mrb[56].mxu0  ;;  %v1912_v18 = vpop.f32.mrb[56].mxu1 }
 0x4db   : > { %v1864_v21 = vadd.f32 %v1857_v17, %v4932_v41  ;;  %v1919_v22 = vadd.f32 %v1912_v18, %v4935_v44  ;;  %v3760_v24 = vpop.f32.mrb[57].mxu0  ;;  %v3768_v25 = vpop.f32.mrb[57].mxu1 }
 0x4dc   : > { %v1860_v43 = vpop.f32.mrb[58].mxu0  ;;  %v1915_v26 = vpop.f32.mrb[58].mxu1  ;;  %v5276_v24 = vld [vmem:[#allocation11 + $0x38] sm:$0xff]   ;;  %v5283_v25 = vld [vmem:[#allocation11] sm:$0xff]  }
 0x4dd   : > { %v3378_v37 = vmul.f32 -1.442695, %v1864_v21  ;;  %v3381_v27 = vmul.f32 -1.442695, %v1919_v22  ;;  %v1865_v19 = vadd.f32 %v1860_v43, %v4944_v49  ;;  %v1920_v20 = vadd.f32 %v1915_v26, %v4947_v52  ;;  %v3761_v39 = vpop.f32.mrb[59].mxu0  ;;  %v3769_v15 = vpop.f32.mrb[59].mxu1 }
 0x4de   : > { %v5264_v21 = vld [vmem:[#allocation11 + $0x30] sm:$0xff]   ;;  %v5273_v22 = vld [vmem:[#allocation11 + $0x28] sm:$0xff]  }
 0x4df   : > { %4143 = vpow2.f32 %v3378_v37  ;;  %v3379_v53 = vmul.f32 -1.442695, %v1865_v19  ;;  %v3382_v40 = vmul.f32 -1.442695, %v1920_v20  ;;  %v5286_v43 = vld [vmem:[#allocation11 + $0x10] sm:$0xff]   ;;  %v5295_v26 = vld [vmem:[#allocation11 + $0x8] sm:$0xff]  }
 0x4e0   : > { %4145 = vpow2.f32 %v3381_v27  ;;  %v5298_v37 = vld [vmem:[#allocation11 + $0x18] sm:$0xff]  }
 0x4e1   : > { %4147 = vpow2.f32 %v3379_v53 }
 0x4e2   : > { %4149 = vpow2.f32 %v3382_v40  ;;  %v1967_v41 = vpop.f32.mrb[60].mxu0  ;;  %v2012_v44 = vpop.f32.mrb[60].mxu1 }
 0x4e3   : > { %v1974_v55 = vadd.f32 %v1967_v41, %v5034_v11  ;;  %v2019_v4 = vadd.f32 %v2012_v44, %v5037_v30  ;;  %v3776_v12 = vpop.f32.mrb[61].mxu0  ;;  %v3784_v9 = vpop.f32.mrb[61].mxu1 }
 0x4e4   : > { %v1970_v29 = vpop.f32.mrb[62].mxu0  ;;  %v2015_v49 = vpop.f32.mrb[62].mxu1  ;;  %v5584_v12 = vld [vmem:[#allocation29_spill] sm:$0xff] }
 0x4e5   : > { %v3385_v32 = vmul.f32 -1.442695, %v2019_v4  ;;  %v1975_v52 = vadd.f32 %v1970_v29, %v5046_v62  ;;  %v2020_v14 = vadd.f32 %v2015_v49, %v5049_v10  ;;  %v3777_v7 = vpop.f32.mrb[63].mxu0  ;;  %v3785_v34 = vpop.f32.mrb[63].mxu1  ;;  %4151 = vtanh.f32 %v1974_v55 }
 0x4e6   : > { %v5586_v34 = vld [vmem:[#allocation41_spill] sm:$0xff] }
 0x4e7   : > { %v3386_v54 = vmul.f32 -1.442695, %v2020_v14  ;;  %4153 = vpow2.f32 %v3385_v32  ;;  %v5585_v14 = vld [vmem:[#allocation40_spill] sm:$0xff] }
 0x4e8   : > { %4155 = vtanh.f32 %v1975_v52 }
 0x4e9   : > { %v4144_v50 = vpop.eup %4143  ;;  %4157 = vpow2.f32 %v3386_v54 }
 0x4ea   : > { %v4146_v35 = vpop.eup %4145  ;;  %v1872_v42 = vadd.f32 1.0, %v4144_v50 }
 0x4eb   : > { %v4148_v11 = vpop.eup %4147  ;;  %v1927_v30 = vadd.f32 1.0, %v4146_v35 }
 0x4ec   : > { %v4150_v36 = vpop.eup %4149  ;;  %4159 = vrcp.f32 %v1872_v42  ;;  %v1873_v16 = vadd.f32 1.0, %v4148_v11 }
 0x4ed   : > { %4161 = vrcp.f32 %v1927_v30  ;;  %v1928_v1 = vadd.f32 1.0, %v4150_v36  ;;  %v5587_v30 = vld [vmem:[#allocation44_spill] sm:$0xff] }
 0x4ee   : > { %4163 = vrcp.f32 %v1873_v16  ;;  %v5588_v16 = vld [vmem:[#allocation45_spill] sm:$0xff] }
 0x4ef   : > { %4165 = vrcp.f32 %v1928_v1  ;;  %v4152_v62 = vpop.eup %4151 }
 0x4f1   : > { %v4154_v10 = vpop.eup %4153 }
 0x4f2   : > { %v4156_v38 = vpop.eup %4155  ;;  %v2027_v46 = vadd.f32 1.0, %v4154_v10 }
 0x4f3   : > { %v4158_v56 = vpop.eup %4157 }
 0x4f4   : > { %v2028_v58 = vadd.f32 1.0, %v4158_v56  ;;  %4167 = vrcp.f32 %v2027_v46 }
 0x4f6   : > { %v4160_v59 = vpop.eup %4159 }
 0x4f7   : > { %v4162_v23 = vpop.eup %4161  ;;  %v2035_v28 = vmul.f32 %v4160_v59, %v4152_v62 }
 0x4f8   : > { %v4164_v60 = vpop.eup %4163  ;;  %v2033_v57 = vmul.f32 %v4162_v23, %v5209_v8 }
 0x4f9   : > { %v4166_v47 = vpop.eup %4165  ;;  %v2036_v51 = vmul.f32 %v4164_v60, %v4156_v38 }
 0x4fa   : > { %v2034_v31 = vmul.f32 %v4166_v47, %v5212_v2  ;;  %v5253_v63 = vadd.f32 %v2035_v28, %v2033_v57  ;;  %v5261_v2 = vld [vmem:[#allocation11 + $0x20] sm:$0xff]  }
 0x4fc   : > { %4169 = vtanh.f32 %v5253_v63  ;;  %v5256_v6 = vadd.f32 %v2036_v51, %v2034_v31 }
 0x4fd   : > { %4171 = vrcp.f32 %v2028_v58 }
 0x4fe   : > { %4173 = vtanh.f32 %v5256_v6  ;;  %v4168_v33 = vpop.eup %4167 }
 0x506   : > { %v4170_v13 = vpop.eup %4169 }
 0x507   : > { %v4172_v45 = vpop.eup %4171  ;;  %v2041_v8 = vmul.f32 %v4170_v13, %v4168_v33 }
 0x508   : > { %v4174_v48 = vpop.eup %4173 }
 0x509   : > { %v2042_v17 = vmul.f32 %v4174_v48, %v4172_v45 }
 0x50b   : > { %v2043_v18 = vpack.c.bf16 %v2042_v17, %v2041_v8 }
 0x50d   : > { %3791 = vmatmul.mubr.msk.bf16.vlgmr.msra.gmra.mrb[64].mxu0 %vm593_vm0, %v2043_v18  ;;  %3799 = vmatmul.mubr.msk.bf16.vlgmr.msra.gmra.mrb[64].mxu1 %vm593_vm0, %v2043_v18 }
 0x50e   : > { %3803 = vmatpush3.bf16.msra.mxu0 %v5261_v2  ;;  %3811 = vmatpush3.bf16.msra.mxu1 %v5264_v21 }
 0x50f   : > { %3804 = vmatprep.subr.bf16.mxu0 %v5583_v3  ;;  %3812 = vmatprep.subr.bf16.mxu1 %v5583_v3 }
 0x510   : > { %3806 = vmatprep.mubr.msk.bf16.mxu0 %vm4520_vm1, %v5583_v3  ;;  %3814 = vmatprep.mubr.msk.bf16.mxu1 %vm4520_vm1, %v5583_v3 }
 0x512   : > { %3805 = vmatpush3.bf16.msra.mxu0 %v5273_v22  ;;  %3813 = vmatpush3.bf16.msra.mxu1 %v5276_v24 }
 0x513   : > { %3818 = vmatprep.subr.bf16.mxu0 %v5583_v3  ;;  %3826 = vmatprep.subr.bf16.mxu1 %v5583_v3 }
 0x515   : > { %3807 = vmatmul.mubr.msk.bf16.vlgmr.msra.gmra.mrb[68].mxu0 %vm593_vm0, %v2043_v18  ;;  %3815 = vmatmul.mubr.msk.bf16.vlgmr.msra.gmra.mrb[68].mxu1 %vm593_vm0, %v2043_v18 }
 0x516   : > { %3819 = vmatpush3.bf16.msra.mxu0 %v5283_v25  ;;  %3827 = vmatpush3.bf16.msra.mxu1 %v5286_v43 }
 0x517   : > { %3820 = vmatprep.subr.bf16.mxu0 %v5583_v3  ;;  %3828 = vmatprep.subr.bf16.mxu1 %v5583_v3 }
 0x518   : > { %3822 = vmatprep.mubr.msk.bf16.mxu0 %vm4520_vm1, %v5583_v3  ;;  %3830 = vmatprep.mubr.msk.bf16.mxu1 %vm4520_vm1, %v5583_v3 }
 0x51a   : > { %3821 = vmatpush3.bf16.msra.mxu0 %v5295_v26  ;;  %3829 = vmatpush3.bf16.msra.mxu1 %v5298_v37 }
 0x51b   : > { %3834 = vmatprep.subr.bf16.mxu0 %v5583_v3  ;;  %3842 = vmatprep.subr.bf16.mxu1 %v5583_v3 }
 0x5e0   : > { %v2081_v27 = vpop.f32.mrb[64].mxu0  ;;  %v2136_v19 = vpop.f32.mrb[64].mxu1 }
 0x5e1   : > { %v2088_v20 = vadd.f32 %v2081_v27, %v4962_v61  ;;  %v2143_v39 = vadd.f32 %v2136_v19, %v4965_v0  ;;  %v3792_v15 = vpop.f32.mrb[65].mxu0  ;;  %v3800_v53 = vpop.f32.mrb[65].mxu1 }
 0x5e2   : > { %v2084_v40 = vpop.f32.mrb[66].mxu0  ;;  %v2139_v41 = vpop.f32.mrb[66].mxu1 }
 0x5e3   : > { %v3388_v44 = vmul.f32 -1.442695, %v2088_v20  ;;  %v3391_v55 = vmul.f32 -1.442695, %v2143_v39  ;;  %v2089_v4 = vadd.f32 %v2084_v40, %v4974_v5  ;;  %v2144_v9 = vadd.f32 %v2139_v41, %v5584_v12  ;;  %v3793_v29 = vpop.f32.mrb[67].mxu0  ;;  %v3801_v49 = vpop.f32.mrb[67].mxu1 }
 0x5e4   : > { %v5589_v29 = vld [vmem:[#allocation25_spill] sm:$0xff] }
 0x5e5   : > { %4175 = vpow2.f32 %v3388_v44  ;;  %v3389_v32 = vmul.f32 -1.442695, %v2089_v4  ;;  %v3392_v52 = vmul.f32 -1.442695, %v2144_v9 }
 0x5e6   : > { %4177 = vpow2.f32 %v3391_v55 }
 0x5e7   : > { %4179 = vpow2.f32 %v3389_v32  ;;  %v5590_v32 = vld [vmem:[#allocation26_spill] sm:$0xff] }
 0x5e8   : > { %4181 = vpow2.f32 %v3392_v52  ;;  %v2191_v61 = vpop.f32.mrb[68].mxu0  ;;  %v2236_v0 = vpop.f32.mrb[68].mxu1 }
 0x5e9   : > { %v2198_v7 = vadd.f32 %v2191_v61, %v5585_v14  ;;  %v2243_v54 = vadd.f32 %v2236_v0, %v5586_v34  ;;  %v3808_v50 = vpop.f32.mrb[69].mxu0  ;;  %v3816_v35 = vpop.f32.mrb[69].mxu1 }
 0x5ea   : > { %v2194_v42 = vpop.f32.mrb[70].mxu0  ;;  %v2239_v5 = vpop.f32.mrb[70].mxu1  ;;  %v5591_v50 = vld [vmem:[#allocation27_spill] sm:$0xff] }
 0x5eb   : > { %v3395_v11 = vmul.f32 -1.442695, %v2243_v54  ;;  %v2199_v36 = vadd.f32 %v2194_v42, %v5587_v30  ;;  %v2244_v1 = vadd.f32 %v2239_v5, %v5588_v16  ;;  %v3809_v62 = vpop.f32.mrb[71].mxu0  ;;  %v3817_v10 = vpop.f32.mrb[71].mxu1  ;;  %4183 = vtanh.f32 %v2198_v7  ;;  %v5592_v42 = vld [vmem:[#allocation28_spill] sm:$0xff] }
 0x5ec   : > { %v5593_v10 = vld [vmem:[#allocation38_spill] sm:$0xff] }
 0x5ed   : > { %v3396_v38 = vmul.f32 -1.442695, %v2244_v1  ;;  %4185 = vpow2.f32 %v3395_v11 }
 0x5ee   : > { %4187 = vtanh.f32 %v2199_v36 }
 0x5ef   : > { %v4176_v56 = vpop.eup %4175  ;;  %4189 = vpow2.f32 %v3396_v38 }
 0x5f0   : > { %v4178_v59 = vpop.eup %4177  ;;  %v2096_v23 = vadd.f32 1.0, %v4176_v56  ;;  %v5594_v56 = vld [vmem:[#allocation39_spill] sm:$0xff] }
 0x5f1   : > { %v4180_v28 = vpop.eup %4179  ;;  %v2151_v46 = vadd.f32 1.0, %v4178_v59 }
 0x5f2   : > { %v4182_v60 = vpop.eup %4181  ;;  %4191 = vrcp.f32 %v2096_v23  ;;  %v2097_v57 = vadd.f32 1.0, %v4180_v28 }
 0x5f3   : > { %4193 = vrcp.f32 %v2151_v46  ;;  %v2152_v47 = vadd.f32 1.0, %v4182_v60 }
 0x5f4   : > { %4195 = vrcp.f32 %v2097_v57 }
 0x5f5   : > { %4197 = vrcp.f32 %v2152_v47  ;;  %v4184_v51 = vpop.eup %4183  ;;  %v5595_v47 = vld [vmem:[#allocation42_spill] sm:$0xff] }
 0x5f7   : > { %v4186_v58 = vpop.eup %4185 }
 0x5f8   : > { %v4188_v31 = vpop.eup %4187  ;;  %v2251_v8 = vadd.f32 1.0, %v4186_v58  ;;  %v5596_v58 = vld [vmem:[#allocation43_spill] sm:$0xff] }
 0x5f9   : > { %v4190_v33 = vpop.eup %4189 }
 0x5fa   : > { %v2252_v20 = vadd.f32 1.0, %v4190_v33  ;;  %4199 = vrcp.f32 %v2251_v8 }
 0x5fc   : > { %v4192_v13 = vpop.eup %4191 }
 0x5fd   : > { %v4194_v45 = vpop.eup %4193  ;;  %v2259_v48 = vmul.f32 %v4192_v13, %v4184_v51 }
 0x5fe   : > { %v4196_v17 = vpop.eup %4195  ;;  %v2257_v18 = vmul.f32 %v4194_v45, %v5253_v63 }
 0x5ff   : > { %v4198_v27 = vpop.eup %4197  ;;  %v2260_v19 = vmul.f32 %v4196_v17, %v4188_v31 }
 0x600   : > { %v2258_v39 = vmul.f32 %v4198_v27, %v5256_v6  ;;  %v5313_v15 = vadd.f32 %v2259_v48, %v2257_v18 }
 0x602   : > { %4201 = vtanh.f32 %v5313_v15  ;;  %v5316_v53 = vadd.f32 %v2260_v19, %v2258_v39 }
 0x603   : > { %4203 = vrcp.f32 %v2252_v20 }
 0x604   : > { %4205 = vtanh.f32 %v5316_v53  ;;  %v4200_v40 = vpop.eup %4199 }
 0x60c   : > { %v4202_v41 = vpop.eup %4201 }
 0x60d   : > { %v4204_v44 = vpop.eup %4203  ;;  %v2265_v63 = vmul.f32 %v4202_v41, %v4200_v40 }
 0x60e   : > { %v4206_v55 = vpop.eup %4205 }
 0x60f   : > { %v2266_v4 = vmul.f32 %v4206_v55, %v4204_v44 }
 0x611   : > { %v2267_v12 = vpack.c.bf16 %v2266_v4, %v2265_v63 }
 0x613   : > { %3823 = vmatmul.mubr.msk.bf16.vlgmr.msra.gmra.mrb[72].mxu0 %vm593_vm0, %v2267_v12  ;;  %3831 = vmatmul.mubr.msk.bf16.vlgmr.msra.gmra.mrb[72].mxu1 %vm593_vm0, %v2267_v12 }
 0x614   : > { %3835 = vmatpush3.bf16.msra.mxu0 %v5261_v2  ;;  %3843 = vmatpush3.bf16.msra.mxu1 %v5264_v21 }
 0x615   : > { %3836 = vmatprep.subr.bf16.mxu0 %v5583_v3  ;;  %3844 = vmatprep.subr.bf16.mxu1 %v5583_v3 }
 0x616   : > { %3838 = vmatprep.mubr.msk.bf16.mxu0 %vm4520_vm1, %v5583_v3  ;;  %3846 = vmatprep.mubr.msk.bf16.mxu1 %vm4520_vm1, %v5583_v3 }
 0x618   : > { %3837 = vmatpush3.bf16.msra.mxu0 %v5273_v22  ;;  %3845 = vmatpush3.bf16.msra.mxu1 %v5276_v24 }
 0x619   : > { %3850 = vmatprep.subr.bf16.mxu0 %v5583_v3  ;;  %3858 = vmatprep.subr.bf16.mxu1 %v5583_v3 }
 0x61b   : > { %3839 = vmatmul.mubr.msk.bf16.vlgmr.msra.gmra.mrb[76].mxu0 %vm593_vm0, %v2267_v12  ;;  %3847 = vmatmul.mubr.msk.bf16.vlgmr.msra.gmra.mrb[76].mxu1 %vm593_vm0, %v2267_v12 }
 0x61c   : > { %3851 = vmatpush3.bf16.msra.mxu0 %v5283_v25  ;;  %3859 = vmatpush3.bf16.msra.mxu1 %v5286_v43 }
 0x61d   : > { %3852 = vmatprep.subr.bf16.mxu0 %v5583_v3  ;;  %3860 = vmatprep.subr.bf16.mxu1 %v5583_v3 }
 0x61e   : > { %3854 = vmatprep.mubr.msk.bf16.mxu0 %vm4520_vm1, %v5583_v3  ;;  %3862 = vmatprep.mubr.msk.bf16.mxu1 %vm4520_vm1, %v5583_v3 }
 0x620   : > { %3853 = vmatpush3.bf16.msra.mxu0 %v5295_v26  ;;  %3861 = vmatpush3.bf16.msra.mxu1 %v5298_v37 }
 0x621   : > { %3866 = vmatprep.subr.bf16.mxu0 %v5583_v3  ;;  %3874 = vmatprep.subr.bf16.mxu1 %v5583_v3 }
 0x6e6   : > { %v2305_v6 = vpop.f32.mrb[72].mxu0  ;;  %v2360_v9 = vpop.f32.mrb[72].mxu1 }
 0x6e7   : > { %v2312_v49 = vadd.f32 %v2305_v6, %v5589_v29  ;;  %v2367_v52 = vadd.f32 %v2360_v9, %v5590_v32  ;;  %v3824_v61 = vpop.f32.mrb[73].mxu0  ;;  %v3832_v0 = vpop.f32.mrb[73].mxu1 }
 0x6e8   : > { %v2308_v14 = vpop.f32.mrb[74].mxu0  ;;  %v2363_v7 = vpop.f32.mrb[74].mxu1 }
 0x6e9   : > { %v3398_v34 = vmul.f32 -1.442695, %v2312_v49  ;;  %v3401_v54 = vmul.f32 -1.442695, %v2367_v52  ;;  %v2313_v35 = vadd.f32 %v2308_v14, %v5591_v50  ;;  %v2368_v5 = vadd.f32 %v2363_v7, %v5592_v42  ;;  %v3825_v11 = vpop.f32.mrb[75].mxu0  ;;  %v3833_v30 = vpop.f32.mrb[75].mxu1 }
 0x6ea   : > { %v5598_v11 = vld [vmem:[#allocation33_spill] sm:$0xff] }
 0x6eb   : > { %4207 = vpow2.f32 %v3398_v34  ;;  %v3399_v36 = vmul.f32 -1.442695, %v2313_v35  ;;  %v3402_v16 = vmul.f32 -1.442695, %v2368_v5 }
 0x6ec   : > { %4209 = vpow2.f32 %v3401_v54 }
 0x6ed   : > { %4211 = vpow2.f32 %v3399_v36 }
 0x6ee   : > { %4213 = vpow2.f32 %v3402_v16  ;;  %v2415_v1 = vpop.f32.mrb[76].mxu0  ;;  %v2460_v62 = vpop.f32.mrb[76].mxu1 }
 0x6ef   : > { %v2422_v38 = vadd.f32 %v2415_v1, %v5593_v10  ;;  %v2467_v59 = vadd.f32 %v2460_v62, %v5594_v56  ;;  %v3840_v23 = vpop.f32.mrb[77].mxu0  ;;  %v3848_v28 = vpop.f32.mrb[77].mxu1  ;;  %v5599_v56 = vld [vmem:[#allocation36_spill] sm:$0xff] }
 0x6f0   : > { %v2418_v46 = vpop.f32.mrb[78].mxu0  ;;  %v2463_v60 = vpop.f32.mrb[78].mxu1 }
 0x6f1   : > { %v3405_v57 = vmul.f32 -1.442695, %v2467_v59  ;;  %v2423_v51 = vadd.f32 %v2418_v46, %v5595_v47  ;;  %v2468_v31 = vadd.f32 %v2463_v60, %v5596_v58  ;;  %v3841_v33 = vpop.f32.mrb[79].mxu0  ;;  %v3849_v13 = vpop.f32.mrb[79].mxu1  ;;  %4215 = vtanh.f32 %v2422_v38  ;;  %v5600_v59 = vld [vmem:[#allocation37_spill] sm:$0xff] }
 0x6f3   : > { %v3406_v45 = vmul.f32 -1.442695, %v2468_v31  ;;  %4217 = vpow2.f32 %v3405_v57  ;;  %v5602_v31 = vld [vmem:[#allocation49_spill] sm:$0xff] }
 0x6f4   : > { %4219 = vtanh.f32 %v2423_v51  ;;  %v5601_v51 = vld [vmem:[#allocation48_spill] sm:$0xff] }
 0x6f5   : > { %v4208_v48 = vpop.eup %4207  ;;  %4221 = vpow2.f32 %v3406_v45 }
 0x6f6   : > { %v4210_v8 = vpop.eup %4209  ;;  %v2320_v17 = vadd.f32 1.0, %v4208_v48 }
 0x6f7   : > { %v4212_v18 = vpop.eup %4211  ;;  %v2375_v27 = vadd.f32 1.0, %v4210_v8 }
 0x6f8   : > { %v4214_v19 = vpop.eup %4213  ;;  %4223 = vrcp.f32 %v2320_v17  ;;  %v2321_v20 = vadd.f32 1.0, %v4212_v18  ;;  %v5603_v18 = vld [vmem:[#allocation52_spill] sm:$0xff] }
 0x6f9   : > { %4225 = vrcp.f32 %v2375_v27  ;;  %v2376_v39 = vadd.f32 1.0, %v4214_v19  ;;  %v5604_v19 = vld [vmem:[#allocation53_spill] sm:$0xff] }
 0x6fa   : > { %4227 = vrcp.f32 %v2321_v20 }
 0x6fb   : > { %4229 = vrcp.f32 %v2376_v39  ;;  %v4216_v40 = vpop.eup %4215 }
 0x6fd   : > { %v4218_v41 = vpop.eup %4217 }
 0x6fe   : > { %v4220_v44 = vpop.eup %4219  ;;  %v2475_v6 = vadd.f32 1.0, %v4218_v41 }
 0x6ff   : > { %v4222_v55 = vpop.eup %4221 }
 0x700   : > { %v2476_v52 = vadd.f32 1.0, %v4222_v55  ;;  %4231 = vrcp.f32 %v2475_v6 }
 0x702   : > { %v4224_v63 = vpop.eup %4223 }
 0x703   : > { %v4226_v4 = vpop.eup %4225  ;;  %v2483_v12 = vmul.f32 %v4224_v63, %v4216_v40 }
 0x704   : > { %v4228_v9 = vpop.eup %4227  ;;  %v2481_v29 = vmul.f32 %v4226_v4, %v5313_v15 }
 0x705   : > { %v4230_v49 = vpop.eup %4229  ;;  %v2484_v32 = vmul.f32 %v4228_v9, %v4220_v44 }
 0x706   : > { %v2482_v61 = vmul.f32 %v4230_v49, %v5316_v53  ;;  %v5357_v0 = vadd.f32 %v2483_v12, %v2481_v29  ;;  %v5597_v53 = vld [vmem:[#allocation32_spill] sm:$0xff] }
 0x708   : > { %4233 = vtanh.f32 %v5357_v0  ;;  %v5360_v14 = vadd.f32 %v2484_v32, %v2482_v61 }
 0x709   : > { %4235 = vrcp.f32 %v2476_v52 }
 0x70a   : > { %4237 = vtanh.f32 %v5360_v14  ;;  %v4232_v7 = vpop.eup %4231 }
 0x712   : > { %v4234_v34 = vpop.eup %4233 }
 0x713   : > { %v4236_v54 = vpop.eup %4235  ;;  %v2489_v15 = vmul.f32 %v4234_v34, %v4232_v7 }
 0x714   : > { %v4238_v50 = vpop.eup %4237 }
 0x715   : > { %v2490_v35 = vmul.f32 %v4238_v50, %v4236_v54 }
 0x717   : > { %v2491_v42 = vpack.c.bf16 %v2490_v35, %v2489_v15 }
 0x719   : > { %3855 = vmatmul.mubr.msk.bf16.vlgmr.msra.gmra.mrb[80].mxu0 %vm593_vm0, %v2491_v42  ;;  %3863 = vmatmul.mubr.msk.bf16.vlgmr.msra.gmra.mrb[80].mxu1 %vm593_vm0, %v2491_v42 }
 0x71a   : > { %3867 = vmatpush3.bf16.msra.mxu0 %v5261_v2  ;;  %3875 = vmatpush3.bf16.msra.mxu1 %v5264_v21 }
 0x71b   : > { %3868 = vmatprep.subr.bf16.mxu0 %v5583_v3  ;;  %3876 = vmatprep.subr.bf16.mxu1 %v5583_v3 }
 0x71c   : > { %3870 = vmatprep.mubr.msk.bf16.mxu0 %vm4520_vm1, %v5583_v3  ;;  %3878 = vmatprep.mubr.msk.bf16.mxu1 %vm4520_vm1, %v5583_v3 }
 0x71e   : > { %3869 = vmatpush3.bf16.msra.mxu0 %v5273_v22  ;;  %3877 = vmatpush3.bf16.msra.mxu1 %v5276_v24 }
 0x71f   : > { %3882 = vmatprep.subr.bf16.mxu0 %v5583_v3  ;;  %3890 = vmatprep.subr.bf16.mxu1 %v5583_v3 }
 0x721   : > { %3871 = vmatmul.mubr.msk.bf16.vlgmr.msra.gmra.mrb[84].mxu0 %vm593_vm0, %v2491_v42  ;;  %3879 = vmatmul.mubr.msk.bf16.vlgmr.msra.gmra.mrb[84].mxu1 %vm593_vm0, %v2491_v42 }
 0x722   : > { %3883 = vmatpush3.bf16.msra.mxu0 %v5283_v25  ;;  %3891 = vmatpush3.bf16.msra.mxu1 %v5286_v43 }
 0x723   : > { %3884 = vmatprep.subr.bf16.mxu0 %v5583_v3  ;;  %3892 = vmatprep.subr.bf16.mxu1 %v5583_v3 }
 0x724   : > { %3886 = vmatprep.mubr.msk.bf16.mxu0 %vm4520_vm1, %v5583_v3  ;;  %3894 = vmatprep.mubr.msk.bf16.mxu1 %vm4520_vm1, %v5583_v3 }
 0x726   : > { %3885 = vmatpush3.bf16.msra.mxu0 %v5295_v26  ;;  %3893 = vmatpush3.bf16.msra.mxu1 %v5298_v37 }
 0x727   : > { %3898 = vmatprep.subr.bf16.mxu0 %v5583_v3  ;;  %3906 = vmatprep.subr.bf16.mxu1 %v5583_v3 }
 0x7ec   : > { %v2529_v25 = vpop.f32.mrb[80].mxu0  ;;  %v2584_v43 = vpop.f32.mrb[80].mxu1 }
 0x7ed   : > { %v2536_v5 = vadd.f32 %v2529_v25, %v5597_v53  ;;  %v2591_v30 = vadd.f32 %v2584_v43, %v5598_v11  ;;  %v3856_v36 = vpop.f32.mrb[81].mxu0  ;;  %v3864_v16 = vpop.f32.mrb[81].mxu1 }
 0x7ee   : > { %v2532_v1 = vpop.f32.mrb[82].mxu0  ;;  %v2587_v62 = vpop.f32.mrb[82].mxu1 }
 0x7ef   : > { %v3408_v10 = vmul.f32 -1.442695, %v2536_v5  ;;  %v3411_v38 = vmul.f32 -1.442695, %v2591_v30  ;;  %v2537_v26 = vadd.f32 %v2532_v1, %v5599_v56  ;;  %v2592_v37 = vadd.f32 %v2587_v62, %v5600_v59  ;;  %v3857_v23 = vpop.f32.mrb[83].mxu0  ;;  %v3865_v28 = vpop.f32.mrb[83].mxu1 }
 0x7f0   : > { %v5605_v56 = vld [vmem:[#allocation30_spill] sm:$0xff]  ;;  %v5606_v59 = vld [vmem:[#allocation31_spill] sm:$0xff] }
 0x7f1   : > { %4239 = vpow2.f32 %v3408_v10  ;;  %v3409_v46 = vmul.f32 -1.442695, %v2537_v26  ;;  %v3412_v60 = vmul.f32 -1.442695, %v2592_v37 }
 0x7f2   : > { %4241 = vpow2.f32 %v3411_v38 }
 0x7f3   : > { %4243 = vpow2.f32 %v3409_v46 }
 0x7f4   : > { %4245 = vpow2.f32 %v3412_v60  ;;  %v2639_v57 = vpop.f32.mrb[84].mxu0  ;;  %v2684_v47 = vpop.f32.mrb[84].mxu1 }
 0x7f5   : > { %v2646_v58 = vadd.f32 %v2639_v57, %v5601_v51  ;;  %v2691_v33 = vadd.f32 %v2684_v47, %v5602_v31  ;;  %v3872_v13 = vpop.f32.mrb[85].mxu0  ;;  %v3880_v45 = vpop.f32.mrb[85].mxu1  ;;  %v5607_v51 = vld [vmem:[#allocation34_spill] sm:$0xff] }
 0x7f6   : > { %v2642_v48 = vpop.f32.mrb[86].mxu0  ;;  %v2687_v8 = vpop.f32.mrb[86].mxu1 }
 0x7f7   : > { %v3415_v17 = vmul.f32 -1.442695, %v2691_v33  ;;  %v2647_v27 = vadd.f32 %v2642_v48, %v5603_v18  ;;  %v2692_v20 = vadd.f32 %v2687_v8, %v5604_v19  ;;  %v3873_v39 = vpop.f32.mrb[87].mxu0  ;;  %v3881_v40 = vpop.f32.mrb[87].mxu1  ;;  %4247 = vtanh.f32 %v2646_v58  ;;  %v5609_v18 = vld [vmem:[#allocation46_spill] sm:$0xff]  ;;  %v5610_v19 = vld [vmem:[#allocation47_spill] sm:$0xff] }
 0x7f9   : > { %v3416_v41 = vmul.f32 -1.442695, %v2692_v20  ;;  %4249 = vpow2.f32 %v3415_v17 }
 0x7fa   : > { %4251 = vtanh.f32 %v2647_v27 }
 0x7fb   : > { %v4240_v44 = vpop.eup %4239  ;;  %4253 = vpow2.f32 %v3416_v41 }
 0x7fc   : > { %v4242_v55 = vpop.eup %4241  ;;  %v2544_v63 = vadd.f32 1.0, %v4240_v44 }
 0x7fd   : > { %v4244_v4 = vpop.eup %4243  ;;  %v2599_v12 = vadd.f32 1.0, %v4242_v55 }
 0x7fe   : > { %v4246_v6 = vpop.eup %4245  ;;  %4255 = vrcp.f32 %v2544_v63  ;;  %v2545_v9 = vadd.f32 1.0, %v4244_v4  ;;  %v5611_v63 = vld [vmem:[#allocation50_spill] sm:$0xff] }
 0x7ff   : > { %4257 = vrcp.f32 %v2599_v12  ;;  %v2600_v29 = vadd.f32 1.0, %v4246_v6  ;;  %v5612_v12 = vld [vmem:[#allocation51_spill] sm:$0xff] }
 0x800   : > { %4259 = vrcp.f32 %v2545_v9 }
 0x801   : > { %4261 = vrcp.f32 %v2600_v29  ;;  %v4248_v49 = vpop.eup %4247 }
 0x803   : > { %v4250_v32 = vpop.eup %4249 }
 0x804   : > { %v4252_v52 = vpop.eup %4251  ;;  %v2699_v50 = vadd.f32 1.0, %v4250_v32 }
 0x805   : > { %v4254_v61 = vpop.eup %4253 }
 0x806   : > { %v2700_v43 = vadd.f32 1.0, %v4254_v61  ;;  %4263 = vrcp.f32 %v2699_v50 }
 0x808   : > { %v4256_v7 = vpop.eup %4255 }
 0x809   : > { %v4258_v34 = vpop.eup %4257  ;;  %v2707_v54 = vmul.f32 %v4256_v7, %v4248_v49  ;;  %v2939_v7 = vld [vmem:[%s4793_s13] sm:$0xff]  ;;  %s503_s13 = scalar_lea.vmem [#allocation12], %s3281_s28  ;;  %s3093_s28 = scalar_lea.sflag [#allocation5], %s4779_s12 }
 0x80a   : > { %v4260_v15 = vpop.eup %4259  ;;  %v2705_v35 = vmul.f32 %v4258_v34, %v5357_v0  ;;  %s3109_s23 = sshll.u32 %s503_s13, 4  ;;  %s3110_s23 = int_to_ptr.vmem [resolvable:$true] %s3109_s23 }
 0x80b   : > { %v4262_v42 = vpop.eup %4261  ;;  %v2708_v25 = vmul.f32 %v4260_v15, %v4252_v52  ;;  %s4427_s15 = scalar_lea.vmem %s3110_s23, 128  ;;  %p4434_p3 = scmp.lt.s32.totalorder %s3110_s23, %s4432_s27 }
 0x80c   : > { %v2706_v53 = vmul.f32 %v4262_v42, %v5360_v14  ;;  %v5401_v5 = vadd.f32 %v2707_v54, %v2705_v35  ;;  %p4428_p8 = scmp.ne.s32.totalorder %s3110_s23, %s4427_s15  ;;  %p4435_p5 = scmp.lt.s32.totalorder %s4433_s14, %s4427_s15 }
 0x80e   : > { %4265 = vtanh.f32 %v5401_v5  ;;  %v5404_v11 = vadd.f32 %v2708_v25, %v2706_v53  ;;  %p4429_p10 = pnand %p4428_p8, %p5614_p9  ;;  %p4436_p11 = por %p4435_p5, %p4434_p3 }
 0x80f   : > { %4267 = vrcp.f32 %v2700_v43 }
 0x810   : > { %4269 = vtanh.f32 %v5404_v11  ;;  %v4264_v30 = vpop.eup %4263  ;;  %p4430_p1 = pneg %p4429_p10 }
 0x812   : > { %p4437_p6 = pnand %p4436_p11, %p4430_p1 }
 0x818   : > { %v4266_v36 = vpop.eup %4265 }
 0x819   : > { %v4268_v0 = vpop.eup %4267  ;;  %v2713_v1 = vmul.f32 %v4266_v36, %v4264_v30 }
 0x81a   : > { %v4270_v16 = vpop.eup %4269 }
 0x81b   : > { %v2714_v62 = vmul.f32 %v4270_v16, %v4268_v0 }
 0x81d   : > { %v2715_v10 = vpack.c.bf16 %v2714_v62, %v2713_v1 }
 0x81f   : > { %3887 = vmatmul.mubr.msk.bf16.vlgmr.msra.gmra.mrb[88].mxu0 %vm593_vm0, %v2715_v10  ;;  %3895 = vmatmul.mubr.msk.bf16.vlgmr.msra.gmra.mrb[88].mxu1 %vm593_vm0, %v2715_v10 }
 0x820   : > { %3899 = vmatpush3.bf16.msra.mxu0 %v5261_v2  ;;  %3907 = vmatpush3.bf16.msra.mxu1 %v5264_v21  ;;  %v4044_v2 = vld [vmem:[#allocation8] sm:$0xff]   ;;  %v3026_v21 = vld [vmem:[%s508_s22] sm:$0xf] }
 0x821   : > { %3900 = vmatprep.subr.bf16.mxu0 %v5583_v3  ;;  %3908 = vmatprep.subr.bf16.mxu1 %v5583_v3 }
 0x822   : > { %3902 = vmatprep.mubr.msk.bf16.mxu0 %vm4520_vm1, %v5583_v3  ;;  %3910 = vmatprep.mubr.msk.bf16.mxu1 %vm4520_vm1, %v5583_v3 }
 0x824   : > { %3901 = vmatpush3.bf16.msra.mxu0 %v5273_v22  ;;  %3909 = vmatpush3.bf16.msra.mxu1 %v5276_v24  ;;  %v4045_v22 = vld [vmem:[%s5515_s7] sm:$0xff]   ;;  %v4046_v24 = vld [vmem:[%s5515_s7 + $0x8] sm:$0xff]  }
 0x825   : > { %3922 = vmatprep.subr.bf16.mxu1 %v5583_v3  ;;  %3914 = vmatprep.subr.bf16.mxu0 %v5583_v3 }
 0x827   : > { %3903 = vmatmul.mubr.msk.bf16.vlgmr.msra.gmra.mrb[92].mxu0 %vm593_vm0, %v2715_v10  ;;  %3911 = vmatmul.mubr.msk.bf16.vlgmr.msra.gmra.mrb[92].mxu1 %vm593_vm0, %v2715_v10 }
 0x828   : > { %3923 = vmatpush3.bf16.msra.mxu1 %v4044_v2  ;;  %3924 = vmatprep.mubr.msk.bf16.mxu1 %vm4520_vm1, %v5583_v3 }
 0x829   : > { %3918 = vmatprep.mubr.msk.bf16.mxu0 %vm4520_vm1, %v5583_v3  ;;  %3915 = vmatpush3.bf16.msra.mxu0 %v4045_v22 }
 0x82a   : > { %3916 = vmatprep.subr.bf16.mxu0 %v5583_v3  ;;  %v5608_v3 = vld [vmem:[#allocation35_spill] sm:$0xff] }
 0x82d   : > { %3917 = vmatpush3.bf16.msra.mxu0 %v4046_v24 }
 0x82f   : > { %3925 = vmatmul.mubr.msk.bf16.vlgmr.msra.gmra.mrb[96].mxu1 %vm3035_vm2, %v3026_v21 }
 0x8f2   : > { %v2753_v14 = vpop.f32.mrb[88].mxu0  ;;  %v2808_v38 = vpop.f32.mrb[88].mxu1 }
 0x8f3   : > { %v2760_v26 = vadd.f32 %v2753_v14, %v5605_v56  ;;  %v2815_v37 = vadd.f32 %v2808_v38, %v5606_v59  ;;  %v3888_v23 = vpop.f32.mrb[89].mxu0  ;;  %v3896_v28 = vpop.f32.mrb[89].mxu1 }
 0x8f4   : > { %v2756_v46 = vpop.f32.mrb[90].mxu0  ;;  %v2811_v60 = vpop.f32.mrb[90].mxu1 }
 0x8f5   : > { %v3418_v57 = vmul.f32 -1.442695, %v2760_v26  ;;  %v3421_v47 = vmul.f32 -1.442695, %v2815_v37  ;;  %v2761_v58 = vadd.f32 %v2756_v46, %v5607_v51  ;;  %v2816_v31 = vadd.f32 %v2811_v60, %v5608_v3  ;;  %v3889_v33 = vpop.f32.mrb[91].mxu0  ;;  %v3897_v13 = vpop.f32.mrb[91].mxu1 }
 0x8f7   : > { %4271 = vpow2.f32 %v3418_v57  ;;  %v3419_v45 = vmul.f32 -1.442695, %v2761_v58  ;;  %v3422_v48 = vmul.f32 -1.442695, %v2816_v31 }
 0x8f8   : > { %4273 = vpow2.f32 %v3421_v47 }
 0x8f9   : > { %4275 = vpow2.f32 %v3419_v45 }
 0x8fa   : > { %4277 = vpow2.f32 %v3422_v48  ;;  %v2863_v8 = vpop.f32.mrb[92].mxu0  ;;  %v2908_v17 = vpop.f32.mrb[92].mxu1 }
 0x8fb   : > { %v2870_v27 = vadd.f32 %v2863_v8, %v5609_v18  ;;  %v2915_v20 = vadd.f32 %v2908_v17, %v5610_v19  ;;  %v3904_v39 = vpop.f32.mrb[93].mxu0  ;;  %v3912_v40 = vpop.f32.mrb[93].mxu1 }
 0x8fc   : > { %v2866_v41 = vpop.f32.mrb[94].mxu0  ;;  %v2911_v44 = vpop.f32.mrb[94].mxu1 }
 0x8fd   : > { %v3425_v55 = vmul.f32 -1.442695, %v2915_v20  ;;  %v2871_v4 = vadd.f32 %v2866_v41, %v5611_v63  ;;  %v2916_v6 = vadd.f32 %v2911_v44, %v5612_v12  ;;  %v3905_v9 = vpop.f32.mrb[95].mxu0  ;;  %v3913_v29 = vpop.f32.mrb[95].mxu1  ;;  %4279 = vtanh.f32 %v2870_v27 }
 0x8ff   : > { %v3426_v49 = vmul.f32 -1.442695, %v2916_v6  ;;  %4281 = vpow2.f32 %v3425_v55 }
 0x900   : > { %4283 = vtanh.f32 %v2871_v4 }
 0x901   : > { %v4272_v32 = vpop.eup %4271  ;;  %4285 = vpow2.f32 %v3426_v49 }
 0x902   : > { %v4274_v52 = vpop.eup %4273  ;;  %v2768_v61 = vadd.f32 1.0, %v4272_v32  ;;  %v3073_v34 = vpop.f32.mrb[96].mxu1 }
 0x903   : > { %v4276_v54 = vpop.eup %4275  ;;  %v2823_v50 = vadd.f32 1.0, %v4274_v52  ;;  %v3079_v15 = vsub.f32 %v2939_v7, %v3073_v34  ;;  %v3926_v35 = vpop.f32.mrb[97].mxu1 }
 0x904   : > { %v4278_v42 = vpop.eup %4277  ;;  %4287 = vrcp.f32 %v2768_v61  ;;  %v2769_v25 = vadd.f32 1.0, %v4276_v54  ;;  %v3076_v43 = vpop.f32.mrb[98].mxu1 }
 0x905   : > { %4289 = vrcp.f32 %v2823_v50  ;;  %v2824_v53 = vadd.f32 1.0, %v4278_v42  ;;  %v3080_v30 = vmul.f32 %v3079_v15, %v3079_v15  ;;  %v3927_v36 = vpop.f32.mrb[99].mxu1 }
 0x906   : > { %4291 = vrcp.f32 %v2769_v25 }
 0x907   : > { %4293 = vrcp.f32 %v2824_v53  ;;  %v3081_v0 = vsel %vm593_vm0, %v3080_v30, 0.0  ;;  %v4280_v16 = vpop.eup %4279 }
 0x908   : > { %3082 = vadd.xlane.f32.xlu1 %v3081_v0 }
 0x909   : > { %v4282_v1 = vpop.eup %4281 }
 0x90a   : > { %v4284_v62 = vpop.eup %4283  ;;  %v2923_v24 = vadd.f32 1.0, %v4282_v1 }
 0x90b   : > { %v4286_v10 = vpop.eup %4285 }
 0x90c   : > { %v2924_v59 = vadd.f32 1.0, %v4286_v10  ;;  %4295 = vrcp.f32 %v2923_v24 }
 0x90e   : > { %v4288_v2 = vpop.eup %4287 }
 0x90f   : > { %v4290_v21 = vpop.eup %4289  ;;  %v2931_v22 = vmul.f32 %v4288_v2, %v4280_v16 }
 0x910   : > { %v4292_v14 = vpop.eup %4291  ;;  %v2929_v38 = vmul.f32 %v4290_v21, %v5401_v5  ;;  %v3015_v5 = vmul.f32 %v2939_v7, %v2939_v7 }
 0x911   : > { %v4294_v56 = vpop.eup %4293  ;;  %v2932_v26 = vmul.f32 %v4292_v14, %v4284_v62 }
 0x912   : > { %v2930_v37 = vmul.f32 %v4294_v56, %v5404_v11  ;;  %v2933_v23 = vadd.f32 %v2931_v22, %v2929_v38  ;;  %v3016_v33 = vsel %vm593_vm0, %v3015_v5, 0.0 }
 0x914   : > { %4297 = vtanh.f32 %v2933_v23  ;;  %v2934_v28 = vadd.f32 %v2932_v26, %v2930_v37 }
 0x915   : > { %4299 = vrcp.f32 %v2924_v59 }
 0x916   : > { %4301 = vtanh.f32 %v2934_v28  ;;  %v4296_v46 = vpop.eup %4295 }
 0x91e   : > { %v4298_v60 = vpop.eup %4297 }
 0x91f   : > { %v4300_v57 = vpop.eup %4299  ;;  %v2937_v47 = vmul.f32 %v4298_v60, %v4296_v46 }
 0x920   : > { %v4302_v51 = vpop.eup %4301 }
 0x921   : > { %v2940_v58 = vpack.c.bf16 %v2937_v47, %v2937_v47  ;;  %v3011_v3 = vmul.f32 %v2937_v47, %v2937_v47  ;;  %v2938_v31 = vmul.f32 %v4302_v51, %v4300_v57  ;;  %v3007_v13 = vmul.f32 %v2939_v7, %v2937_v47 }
 0x923   : > { %3919 = vmatmul.mubr.msk.bf16.vlgmr.msra.gmra.mrb[96].mxu0 %vm593_vm0, %v2940_v58  ;;  %v3012_v11 = vsel %vm593_vm0, %v3011_v3, 0.0  ;;  %v3008_v45 = vsel %vm593_vm0, %v3007_v13, 0.0 }
 0x924   : > { %3013 = vadd.xlane.f32.xlu0 %v3012_v11 }
 0x928   : > { %3017 = vadd.xlane.f32.xlu0 %v3016_v33 }
 0x92c   : > { %3009 = vadd.xlane.f32.xlu0 %v3008_v45 }
 0x995   : > { %v3083_v48 = vpop.xlane.xlu1 %3082 }
 0x996   : > { %v3084_v8 = vmax.f32 %v3083_v48, 1e-24 }
 0x998   : > { %4303 = vrsqrt.f32 %v3084_v8 }
 0x9a2   : > { %v4304_v17 = vpop.eup %4303 }
 0x9a3   : > { %v3086_v18 = vmul.f32 %v4304_v17, %v3079_v15 }
 0x9a5   : > { %3087 = vst.msk [vmem:[%s503_s13] sm:$0xff] %vm593_vm0, %v3086_v18 }
 0x9f6   : > { %v2994_v27 = vpop.f32.mrb[96].mxu0 }
 0x9f7   : > { %v3000_v19 = vmul.f32 %v2994_v27, %v2938_v31  ;;  %v3920_v20 = vpop.f32.mrb[97].mxu0 }
 0x9f8   : > { %v2997_v39 = vpop.f32.mrb[98].mxu0 }
 0x9f9   : > { %v3921_v40 = vpop.f32.mrb[99].mxu0  ;;  %v3001_v41 = vsel %vm593_vm0, %v3000_v19, 0.0 }
 0x9fa   : > { %3002 = vadd.xlane.f32.xlu1 %v3001_v41 }
 0x9fb   : > { %4440 = shalt.err (!%p4437_p6)
}
 0x9fc   : > { %s4441_s8 = scalar_lea.hbm %s5466_s11, 128  ;;  %s4445_s9 = scalar_lea.hbm %s5613_s10, 256 }
 0x9fd   : > { %p4442_p4 = scmp.ne.s32.totalorder %s5466_s11, %s4441_s8  ;;  %p4446_p13 = scmp.lt.u32.totalorder %s5466_s11, %s5613_s10 }
 0x9fe   : > { %p4447_p0 = scmp.lt.u32.totalorder %s4445_s9, %s4441_s8  ;;  %p4449_p8 = scmp.lt.u32.totalorder %s4441_s8, %s5466_s11 }
 0x9ff   : > { %p4443_p2 = pnand %p4442_p4, %p5614_p9 }
 0xa00   : > { %p4448_p7 = por %p4447_p0, %p4446_p13 }
 0xa01   : > { %p4444_p12 = pneg %p4443_p2 }
 0xa02   : > { %p4450_p10 = por %p4449_p8, %p4448_p7 }
 0xa04   : > { %p4451_p1 = pnand %p4450_p10, %p4444_p12 }
 0xa06   : > { %4454 = shalt.err (!%p4451_p1)
}
 0xa07   : > { %3951 = dma.vmem_to_hbm [thread:$0]  (%p5614_p9), %s3110_s23, 128, %s5466_s11, %s3093_s28   ;;  %v3014_v44 = vpop.xlane.xlu0 %3013  ;;  %vm3024_vm3 = vcmask 7168  }
 0xa08   : > { %s3004_s25 = sld [smem:[#allocation2]]  ;;  %s3287_s13 = sshll.u32 %s5419_s20, 3 }
 0xa09   : > { %s5615_s21 = sld [smem:[#allocation55_spill]] }
 0xa0b   : > { %v3018_v55 = vpop.xlane.xlu0 %3017 }
 0xa0c   : > { %v3019_v63 = vmul.f32 %v3018_v55, %v3014_v44 }
 0xa0e   : > { %v3020_v4 = vmax.f32 %v3019_v63, 1e-16  ;;  %v3005_v6 = vstv %s3004_s25 }
 0xa0f   : > { %v3010_v9 = vpop.xlane.xlu0 %3009  ;;  %s512_s26 = scalar_lea.vmem %s5615_s21, %s3287_s13 }
 0xa10   : > { %4305 = vrsqrt.f32 %v3020_v4 }
 0xa1a   : > { %v4306_v12 = vpop.eup %4305 }
 0xa1b   : > { %v3022_v49 = vmul.f32 %v4306_v12, %v3010_v9 }
 0xa87   : > { %v3003_v29 = vpop.xlane.xlu1 %3002 }
 0xa88   : > { %v3006_v32 = vadd.f32 %v3005_v6, %v3003_v29 }
 0xa8a   : > { %v3023_v52 = vmul.f32 %v3022_v49, %v3006_v32 }
 0xa8c   : > { %3025 = vst.msk [vmem:[%s512_s26] sm:$0xff] %vm3024_vm3, %v3023_v52 }
 0xa8d PF: > { %s5616_s23 = sld [smem:[#allocation21_spill]]  ;;  %s5617_s11 = sld [smem:[#allocation24_spill]] }
 0xa8e   : > { %p5619_p3 = scmp.ge.s32.totalorder %s4505_s18, 2 }
 0xa93   : > { %s3128_s28 = sand.u32 1, %s5616_s23   ;;  %p5618_p9 = scmp.ne.s32.totalorder %s5617_s11, 0 }
 0xa94   : > { %s3129_s20 = scalar_lea.sflag [#allocation5], %s3128_s28 }
 0xa95   : > { %p3964_p5 = pnand %p5619_p3, %p5618_p9 }
 0xa97   : > { %4488 = dma.done.wait (!%p3964_p5), %s3129_s20, 128  }
 0xa98   : > { %4490 = vsyncadd (!%p3964_p5), %s3129_s20, 4294967168  ;;  %s5620_s18 = sld [smem:[#allocation22_spill]]  ;;  %s5621_s19 = sld [smem:[#allocation23_spill]] }
 0xa99   : > { %s5622_s15 = smov %s4497_s16  ;;  %s5623_s16 = smov %s4501_s17 }
 0xa9e   : > { %p29_p11 = scmp.ge.s32.totalorder %s5620_s18, 4   ;;  %s5624_s17 = smov %s5621_s19 }
 0xaa0   :  { %31 = sbr.rel (!%p29_p11) target bundleno = 13 (0xd), region = 155 }
 0xaa7   :  { %3134 = vsyncpa [#allocation4], 1 }
 0xaa8   :  { %3136 = vsyncpa [#allocation4 + $0x1], 1 }
 0xaa9   :  { %3137 = vsyncpa [#allocation7], 1 }
 0xaaa   :  { %3139 = vsyncpa [#allocation7 + $0x1], 1 }
 0xaab   :  { %3140 = vsyncpa [#allocation10], 1 }
 0xaac   :  { %3141 = vsyncpa [#allocation5], 1 }
 0xaad   :  { %3143 = vsyncpa [#allocation5 + $0x1], 1 }

</bundles_post_ra>
